<compile_context>
chip_gen: v6e
topology: v6e:2x2x1
jax: 0.10.0
libtpu: 0.0.40
codegen_flags: <defaults>
</compile_context>

<pallas_src>
import jax
import jax.numpy as jnp
from jax.experimental import pallas as pl
from jax.experimental.pallas import tpu as pltpu

# Depthwise conv hyper-params.  The residual add in the PyTorch module requires
# a same-length output: T + 2*PADDING - DILATION*(KSIZE-1) == T.
KSIZE = 3
DILATION = 2
PADDING = 2
EPS = 1e-10  # nn.GroupNorm(1, C, eps=1e-10)


def _groupnorm_normalize(h3, inv_n):
    """GroupNorm(num_groups=1) WITHOUT affine (affine folded into the next
    conv's weights in the wrapper). Per-sample stats over (T, C), single pass,
    f32 accumulation, variance clamped to >= 0 to avoid rsqrt(negative)."""
    s1 = jnp.sum(jnp.sum(h3, axis=2, keepdims=True), axis=1, keepdims=True)
    s2 = jnp.sum(jnp.sum(h3 * h3, axis=2, keepdims=True), axis=1, keepdims=True)
    mean = s1 * inv_n
    var = jnp.maximum(s2 * inv_n - mean * mean, 0.0)
    return (h3 - mean) * jax.lax.rsqrt(var + EPS)


def _sep_block_kernel(x_ref,
                      w_emb_ref, b_emb_ref, a1_ref,
                      w_dw_ref, dw_off_ref, b_dw_ref, a2_ref,
                      w_heads_ref, b_heads_ref,
                      out_ref):
    BB, T, E = x_ref.shape
    H = w_emb_ref.shape[1]
    SE = out_ref.shape[2]
    S = SE - E
    n_rows = BB * T
    inv_n = 1.0 / float(T * H)

    # ---- embed 1x1 conv: bf16 MXU matmul (batch folded into M), f32 acc ----
    x_bf = x_ref[...].astype(jnp.bfloat16).reshape(n_rows, E)
    h = jnp.dot(x_bf, w_emb_ref[...], preferred_element_type=jnp.float32)
    h = h + b_emb_ref[...]

    # ---- PReLU #1 (single shared alpha, read from SMEM) ----
    a1 = a1_ref[0, 0]
    h = jnp.where(h >= 0.0, h, a1 * h)

    # ---- GroupNorm #1 (affine folded into the depthwise weights) ----
    hn = _groupnorm_normalize(h.reshape(BB, T, H), inv_n).reshape(n_rows, H)

    # ---- depthwise dilated conv via sublane rolls (no VMEM scratch) ----
    # w_dw_ref rows carry g1; be1 is folded into b_dw plus per-tap boundary
    # corrections dw_off = -be1*w_dw, so masked (zero-padded) taps contribute
    # exactly 0 -- bit-for-bit the same math as the PyTorch padded conv.
    w_dw = w_dw_ref[...]                     # (KSIZE, H) f32, read once
    dw_off = dw_off_ref[...]                 # (KSIZE, H) f32
    t_idx = jax.lax.broadcasted_iota(jnp.int32, (BB, T, H), 1).reshape(n_rows, H)
    acc = None
    for k in range(KSIZE):
        off = k * DILATION - PADDING
        wk = w_dw[k:k + 1, :]
        if off == 0:
            contrib = wk * hn
        else:
            rolled = pltpu.roll(hn, (-off) % n_rows, 0)   # result[r] = hn[r+off]
            if off < 0:
                valid = t_idx >= (-off)
            else:
                valid = t_idx < (T - off)
            # Rolls are circular, but every wrapped / cross-sample row lands in
            # the masked region, so masking makes the flattened roll exact.
            contrib = jnp.where(valid, wk * rolled, dw_off[k:k + 1, :])
        acc = contrib if acc is None else acc + contrib
    h = acc + b_dw_ref[...]

    # ---- PReLU #2 ----
    a2 = a2_ref[0, 0]
    h = jnp.where(h >= 0.0, h, a2 * h)

    # ---- GroupNorm #2 (affine folded into the fused head weights) ----
    hn2 = _groupnorm_normalize(h.reshape(BB, T, H), inv_n).reshape(n_rows, H)

    # ---- fused heads: one MXU matmul producing [skip | residual] ----
    heads = jnp.dot(hn2.astype(jnp.bfloat16), w_heads_ref[...],
                    preferred_element_type=jnp.float32)   # (n_rows, S+E)
    heads = heads + b_heads_ref[...]
    # Residual add via a left-zero-padded x (f32): one lane-dense combined
    # store, no lane-boundary slicing of `heads` inside the kernel.
    x_res = x_ref[...].astype(jnp.float32).reshape(n_rows, E)
    heads = heads + jnp.concatenate(
        [jnp.zeros((n_rows, S), jnp.float32), x_res], axis=1)
    out_ref[...] = heads.reshape(BB, T, SE).astype(out_ref.dtype)


def _pick_block_batch(batch, seq_len, target_rows=256, min_grid=2):
    """Per-step batch bb (divisor of `batch`): prefer the smallest bb with
    bb*seq_len >= target_rows that still leaves >= min_grid grid steps;
    otherwise the largest bb keeping >= min_grid steps; otherwise all of it.
    NOTE: on v7x (2 TensorCores) min_grid should be 4 (2 pipelined steps/TC)."""
    divs = [d for d in range(1, batch + 1) if batch % d == 0]
    good = [d for d in divs if d * seq_len >= target_rows and batch // d >= min_grid]
    if good:
        return min(good)
    ok = [d for d in divs if batch // d >= min_grid]
    if ok:
        return max(ok)
    return batch


def conv1d_separation_block(x, params):
    """x: (B, T, E) float32, channels-last.

    Returns (residual (B, T, E), skip (B, T, S)) -- same semantics as the
    PyTorch module's forward (which uses (B, C, T); transpose at the boundary).
    """
    B, T, E = x.shape
    H = params["w_emb"].shape[1]
    S = params["w_skip"].shape[1]
    assert T % 8 == 0, "T must be a multiple of 8 (sublane tiling)"
    assert 2 * PADDING == DILATION * (KSIZE - 1), "residual add needs same-length conv"

    bb = _pick_block_batch(B, T, target_rows=256, min_grid=2)
    grid = (B // bb,)

    # ---- one-time weight prep: fold GN affines into adjacent convs ----
    g1, be1 = params["g1"], params["be1"]
    g2, be2 = params["g2"], params["be2"]
    w_dw, b_dw = params["w_dw"], params["b_dw"]

    w_emb_bf = params["w_emb"].astype(jnp.bfloat16)                        # (E, H)
    w_dw_fold = (w_dw * g1).astype(jnp.float32)                            # (K, H)
    b_dw_fold = b_dw + be1 * jnp.sum(w_dw, axis=0, keepdims=True)          # (1, H)
    dw_off = -(be1 * w_dw)                                                 # (K, H)

    w_heads = jnp.concatenate([params["w_skip"], params["w_out"]], axis=1)   # (H, S+E)
    b_heads = jnp.concatenate([params["b_skip"], params["b_out"]], axis=1)   # (1, S+E)
    w_heads_bf = (w_heads * g2.reshape(H, 1)).astype(jnp.bfloat16)           # g2 folded
    b_heads_fold = b_heads + be2 @ w_heads                                   # be2 folded

    inputs = [x,
              w_emb_bf, params["b_emb"], params["a1"],
              w_dw_fold, dw_off, b_dw_fold, params["a2"],
              w_heads_bf, b_heads_fold]

    def vmem_full(arr):
        nd = arr.ndim
        return pl.BlockSpec(arr.shape, lambda b, _nd=nd: (0,) * _nd)

    def smem_scalar():
        return pl.BlockSpec(memory_space=pltpu.MemorySpace.SMEM)

    in_specs = [pl.BlockSpec((bb, T, E), lambda b: (b, 0, 0)),
                vmem_full(w_emb_bf), vmem_full(params["b_emb"]), smem_scalar(),
                vmem_full(w_dw_fold), vmem_full(dw_off), vmem_full(b_dw_fold),
                smem_scalar(),
                vmem_full(w_heads_bf), vmem_full(b_heads_fold)]

    out_spec = pl.BlockSpec((bb, T, S + E), lambda b: (b, 0, 0))
    out_shape = jax.ShapeDtypeStruct((B, T, S + E), x.dtype)

    # VMEM budget: double-buffered in/out blocks + weights + f32 intermediates,
    # 2x safety, clamped to [16 MiB, 48 MiB] (<= 48 MiB keeps headroom on v7x).
    blk = 4 * bb * T * (2 * E + 2 * (S + E) + 6 * H)
    wts = 4 * (E * H + 3 * KSIZE * H + H * (S + E) + 2 * (S + E) + H)
    vmem_limit = int(min(max(2 * (blk + wts), 16 << 20), 48 << 20))

    combined = pl.pallas_call(
        _sep_block_kernel,
        grid_spec=pltpu.PrefetchScalarGridSpec(
            num_scalar_prefetch=0,
            grid=grid,
            in_specs=in_specs,
            out_specs=out_spec,
        ),
        out_shape=out_shape,
        compiler_params=pltpu.CompilerParams(
            dimension_semantics=("parallel",),
            vmem_limit_bytes=vmem_limit,
        ),
    )(*inputs)

    skip = combined[..., :S]
    res = combined[..., S:]
    return res, skip


def reference(x, p):
    """Pure-JAX f32 reference (mirrors the PyTorch forward in (B,T,C) layout,
    using the ORIGINAL, un-folded parameters)."""
    T = x.shape[1]
    h = jnp.einsum("bte,eh->bth", x, p["w_emb"]) + p["b_emb"]
    h = jnp.where(h >= 0, h, p["a1"] * h)
    mean = jnp.mean(h, axis=(1, 2), keepdims=True)
    var = jnp.mean((h - mean) ** 2, axis=(1, 2), keepdims=True)
    h = (h - mean) / jnp.sqrt(var + EPS) * p["g1"] + p["be1"]
    hp = jnp.pad(h, ((0, 0), (PADDING, PADDING), (0, 0)))
    acc = 0.0
    for k in range(KSIZE):
        acc = acc + hp[:, k * DILATION:k * DILATION + T, :] * p["w_dw"][k]
    h = acc + p["b_dw"]
    h = jnp.where(h >= 0, h, p["a2"] * h)
    mean = jnp.mean(h, axis=(1, 2), keepdims=True)
    var = jnp.mean((h - mean) ** 2, axis=(1, 2), keepdims=True)
    h = (h - mean) / jnp.sqrt(var + EPS) * p["g2"] + p["be2"]
    skip = jnp.einsum("bth,hs->bts", h, p["w_skip"]) + p["b_skip"]
    res = jnp.einsum("bth,he->bte", h, p["w_out"]) + p["b_out"] + x
    return res, skip


if __name__ == "__main__":
    # Small shapes: embed_channel_size=16, block_channel_size=32,
    # skip_connection_channel_size=16, kernel_size=3, dilation=2, padding=2.
    # B=8 exercises batch folding (bb=4) with a 2-step pipelined grid.
    B, T, E, H, S = 8, 32, 16, 32, 16

    key = jax.random.PRNGKey(0)
    ks = jax.random.split(key, 13)
    params = {
        "w_emb":  0.1 * jax.random.normal(ks[0], (E, H), jnp.float32),
        "b_emb":  0.1 * jax.random.normal(ks[1], (1, H), jnp.float32),
        "a1":     jnp.full((1, 1), 0.25, jnp.float32),   # PReLU default init
        "g1":     1.0 + 0.1 * jax.random.normal(ks[2], (1, H), jnp.float32),
        "be1":    0.1 * jax.random.normal(ks[3], (1, H), jnp.float32),
        "w_dw":   0.1 * jax.random.normal(ks[4], (KSIZE, H), jnp.float32),
        "b_dw":   0.1 * jax.random.normal(ks[5], (1, H), jnp.float32),
        "a2":     jnp.full((1, 1), 0.25, jnp.float32),
        "g2":     1.0 + 0.1 * jax.random.normal(ks[6], (1, H), jnp.float32),
        "be2":    0.1 * jax.random.normal(ks[7], (1, H), jnp.float32),
        "w_skip": 0.1 * jax.random.normal(ks[8], (H, S), jnp.float32),
        "b_skip": 0.1 * jax.random.normal(ks[9], (1, S), jnp.float32),
        "w_out":  0.1 * jax.random.normal(ks[10], (H, E), jnp.float32),
        "b_out":  0.1 * jax.random.normal(ks[11], (1, E), jnp.float32),
    }
    x = jax.random.normal(ks[12], (B, T, E), jnp.float32)

    res, skip = conv1d_separation_block(x, params)
    jax.block_until_ready((res, skip))

    res_ref, skip_ref = reference(x, params)
    # Tolerance reflects bf16 MXU operands (f32 accumulation) and the GN-affine
    # folds changing the bf16 rounding order; all elementwise math stays f32.
    assert jnp.allclose(res, res_ref, atol=5e-2, rtol=5e-2), "residual mismatch"
    assert jnp.allclose(skip, skip_ref, atol=5e-2, rtol=5e-2), "skip mismatch"

    print("KERNEL_OK")
</pallas_src>

<mosaic_0001>
module attributes {stable_mosaic.version = 11 : i64} {
  func.func @_sep_block_kernel(%arg0: i32, %arg1: memref<4x32x16xf32, #tpu.memory_space<vmem>>, %arg2: memref<16x32xbf16, #tpu.memory_space<vmem>>, %arg3: memref<1x32xf32, #tpu.memory_space<vmem>>, %arg4: memref<1x1xf32, #tpu.memory_space<smem>>, %arg5: memref<3x32xf32, #tpu.memory_space<vmem>>, %arg6: memref<3x32xf32, #tpu.memory_space<vmem>>, %arg7: memref<1x32xf32, #tpu.memory_space<vmem>>, %arg8: memref<1x1xf32, #tpu.memory_space<smem>>, %arg9: memref<32x32xbf16, #tpu.memory_space<vmem>>, %arg10: memref<1x32xf32, #tpu.memory_space<vmem>>, %arg11: memref<4x32x32xf32, #tpu.memory_space<vmem>>) attributes {dimension_semantics = [#tpu.dimension_semantics<parallel>], iteration_bounds = array<i64: 2>, scalar_prefetch = 0 : i64, scratch_operands = 0 : i64, tpu.core_type = #tpu.core_type<tc>, window_params = [{transform_indices = @transform_0, window_bounds = array<i64: 4, 32, 16>}, {pipeline_mode = #tpu.pipeline_mode<synchronous>, transform_indices = @transform_1, window_bounds = array<i64: 16, 32>}, {pipeline_mode = #tpu.pipeline_mode<synchronous>, transform_indices = @transform_2, window_bounds = array<i64: 1, 32>}, {transform_indices = @transform_3, window_bounds = array<i64: 1, 1>}, {pipeline_mode = #tpu.pipeline_mode<synchronous>, transform_indices = @transform_4, window_bounds = array<i64: 3, 32>}, {pipeline_mode = #tpu.pipeline_mode<synchronous>, transform_indices = @transform_5, window_bounds = array<i64: 3, 32>}, {pipeline_mode = #tpu.pipeline_mode<synchronous>, transform_indices = @transform_6, window_bounds = array<i64: 1, 32>}, {transform_indices = @transform_7, window_bounds = array<i64: 1, 1>}, {pipeline_mode = #tpu.pipeline_mode<synchronous>, transform_indices = @transform_8, window_bounds = array<i64: 32, 32>}, {pipeline_mode = #tpu.pipeline_mode<synchronous>, transform_indices = @transform_9, window_bounds = array<i64: 1, 32>}, {transform_indices = @transform_10, window_bounds = array<i64: 4, 32, 32>}]} {
    %c0 = arith.constant 0 : index
    %c0_0 = arith.constant 0 : index
    %c0_1 = arith.constant 0 : index
    %0 = vector.load %arg1[%c0, %c0_0, %c0_1] : memref<4x32x16xf32, #tpu.memory_space<vmem>>, vector<4x32x16xf32>
    %1 = arith.truncf %0 : vector<4x32x16xf32> to vector<4x32x16xbf16>
    %2 = vector.shape_cast %1 : vector<4x32x16xbf16> to vector<128x16xbf16>
    %c0_2 = arith.constant 0 : index
    %c0_3 = arith.constant 0 : index
    %3 = vector.load %arg2[%c0_2, %c0_3] : memref<16x32xbf16, #tpu.memory_space<vmem>>, vector<16x32xbf16>
    %cst = arith.constant dense<0.000000e+00> : vector<128x32xf32>
    %4 = tpu.matmul %2, %3, %cst {dimension_numbers = #tpu.dot_dimension_numbers<[1], [0], [0], [1], [0, 0, 1, 1], [], []>} : vector<128x16xbf16>, vector<16x32xbf16>, vector<128x32xf32> -> vector<128x32xf32>
    %c0_4 = arith.constant 0 : index
    %c0_5 = arith.constant 0 : index
    %5 = vector.load %arg3[%c0_4, %c0_5] : memref<1x32xf32, #tpu.memory_space<vmem>>, vector<1x32xf32>
    %6 = vector.broadcast %5 : vector<1x32xf32> to vector<128x32xf32>
    %7 = arith.addf %4, %6 : vector<128x32xf32>
    %c0_6 = arith.constant 0 : index
    %c0_7 = arith.constant 0 : index
    %8 = memref.load %arg4[%c0_6, %c0_7] : memref<1x1xf32, #tpu.memory_space<smem>>
    %cst_8 = arith.constant 0.000000e+00 : f32
    %9 = vector.broadcast %cst_8 : f32 to vector<128x32xf32>
    %10 = arith.cmpf oge, %7, %9 : vector<128x32xf32>
    %11 = vector.broadcast %8 : f32 to vector<128x32xf32>
    %12 = arith.mulf %11, %7 : vector<128x32xf32>
    %13 = arith.select %10, %7, %12 : vector<128x32xi1>, vector<128x32xf32>
    %14 = vector.shape_cast %13 : vector<128x32xf32> to vector<4x32x32xf32>
    %cst_9 = arith.constant dense<0.000000e+00> : vector<4x32xf32>
    %15 = vector.multi_reduction <add>, %14, %cst_9 [2] : vector<4x32x32xf32> to vector<4x32xf32>
    %16 = vector.shape_cast %15 : vector<4x32xf32> to vector<4x32x1xf32>
    %cst_10 = arith.constant dense<0.000000e+00> : vector<4x1xf32>
    %17 = vector.multi_reduction <add>, %16, %cst_10 [1] : vector<4x32x1xf32> to vector<4x1xf32>
    %18 = vector.shape_cast %17 : vector<4x1xf32> to vector<4x1x1xf32>
    %19 = arith.mulf %14, %14 : vector<4x32x32xf32>
    %cst_11 = arith.constant dense<0.000000e+00> : vector<4x32xf32>
    %20 = vector.multi_reduction <add>, %19, %cst_11 [2] : vector<4x32x32xf32> to vector<4x32xf32>
    %21 = vector.shape_cast %20 : vector<4x32xf32> to vector<4x32x1xf32>
    %cst_12 = arith.constant dense<0.000000e+00> : vector<4x1xf32>
    %22 = vector.multi_reduction <add>, %21, %cst_12 [1] : vector<4x32x1xf32> to vector<4x1xf32>
    %23 = vector.shape_cast %22 : vector<4x1xf32> to vector<4x1x1xf32>
    %cst_13 = arith.constant 9.765625E-4 : f32
    %24 = vector.broadcast %cst_13 : f32 to vector<4x1x1xf32>
    %25 = arith.mulf %18, %24 : vector<4x1x1xf32>
    %cst_14 = arith.constant 9.765625E-4 : f32
    %26 = vector.broadcast %cst_14 : f32 to vector<4x1x1xf32>
    %27 = arith.mulf %23, %26 : vector<4x1x1xf32>
    %28 = arith.mulf %25, %25 : vector<4x1x1xf32>
    %29 = arith.subf %27, %28 : vector<4x1x1xf32>
    %cst_15 = arith.constant 0.000000e+00 : f32
    %30 = vector.broadcast %cst_15 : f32 to vector<4x1x1xf32>
    %31 = arith.maximumf %29, %30 : vector<4x1x1xf32>
    %32 = vector.broadcast %25 : vector<4x1x1xf32> to vector<4x32x32xf32>
    %33 = arith.subf %14, %32 : vector<4x32x32xf32>
    %cst_16 = arith.constant 1.000000e-10 : f32
    %34 = vector.broadcast %cst_16 : f32 to vector<4x1x1xf32>
    %35 = arith.addf %31, %34 : vector<4x1x1xf32>
    %36 = math.rsqrt %35 : vector<4x1x1xf32>
    %37 = vector.broadcast %36 : vector<4x1x1xf32> to vector<4x32x32xf32>
    %38 = arith.mulf %33, %37 : vector<4x32x32xf32>
    %39 = vector.shape_cast %38 : vector<4x32x32xf32> to vector<128x32xf32>
    %c0_17 = arith.constant 0 : index
    %c0_18 = arith.constant 0 : index
    %40 = vector.load %arg5[%c0_17, %c0_18] : memref<3x32xf32, #tpu.memory_space<vmem>>, vector<3x32xf32>
    %c0_19 = arith.constant 0 : index
    %c0_20 = arith.constant 0 : index
    %41 = vector.load %arg6[%c0_19, %c0_20] : memref<3x32xf32, #tpu.memory_space<vmem>>, vector<3x32xf32>
    %42 = tpu.iota {dimensions = array<i32: 1>} : vector<4x32x32xi32>
    %43 = vector.shape_cast %42 : vector<4x32x32xi32> to vector<128x32xi32>
    %44 = vector.extract_strided_slice %40 {offsets = [0, 0], sizes = [1, 32], strides = [1, 1]} : vector<3x32xf32> to vector<1x32xf32>
    %c2_i32 = arith.constant 2 : i32
    %45 = tpu.dynamic_rotate %39 by %c2_i32 dim 0 : vector<128x32xf32>, i32 -> vector<128x32xf32>
    %c2_i32_21 = arith.constant 2 : i32
    %46 = vector.broadcast %c2_i32_21 : i32 to vector<128x32xi32>
    %47 = arith.cmpi sge, %43, %46 : vector<128x32xi32>
    %48 = vector.broadcast %44 : vector<1x32xf32> to vector<128x32xf32>
    %49 = arith.mulf %48, %45 : vector<128x32xf32>
    %50 = vector.extract_strided_slice %41 {offsets = [0, 0], sizes = [1, 32], strides = [1, 1]} : vector<3x32xf32> to vector<1x32xf32>
    %51 = vector.shape_cast %50 : vector<1x32xf32> to vector<1x32xf32>
    %52 = vector.broadcast %51 : vector<1x32xf32> to vector<128x32xf32>
    %53 = arith.select %47, %49, %52 : vector<128x32xi1>, vector<128x32xf32>
    %54 = vector.extract_strided_slice %40 {offsets = [1, 0], sizes = [1, 32], strides = [1, 1]} : vector<3x32xf32> to vector<1x32xf32>
    %55 = vector.broadcast %54 : vector<1x32xf32> to vector<128x32xf32>
    %56 = arith.mulf %55, %39 : vector<128x32xf32>
    %57 = arith.addf %53, %56 : vector<128x32xf32>
    %58 = vector.extract_strided_slice %40 {offsets = [2, 0], sizes = [1, 32], strides = [1, 1]} : vector<3x32xf32> to vector<1x32xf32>
    %c126_i32 = arith.constant 126 : i32
    %59 = tpu.dynamic_rotate %39 by %c126_i32 dim 0 : vector<128x32xf32>, i32 -> vector<128x32xf32>
    %c30_i32 = arith.constant 30 : i32
    %60 = vector.broadcast %c30_i32 : i32 to vector<128x32xi32>
    %61 = arith.cmpi slt, %43, %60 : vector<128x32xi32>
    %62 = vector.broadcast %58 : vector<1x32xf32> to vector<128x32xf32>
    %63 = arith.mulf %62, %59 : vector<128x32xf32>
    %64 = vector.extract_strided_slice %41 {offsets = [2, 0], sizes = [1, 32], strides = [1, 1]} : vector<3x32xf32> to vector<1x32xf32>
    %65 = vector.shape_cast %64 : vector<1x32xf32> to vector<1x32xf32>
    %66 = vector.broadcast %65 : vector<1x32xf32> to vector<128x32xf32>
    %67 = arith.select %61, %63, %66 : vector<128x32xi1>, vector<128x32xf32>
    %68 = arith.addf %57, %67 : vector<128x32xf32>
    %c0_22 = arith.constant 0 : index
    %c0_23 = arith.constant 0 : index
    %69 = vector.load %arg7[%c0_22, %c0_23] : memref<1x32xf32, #tpu.memory_space<vmem>>, vector<1x32xf32>
    %70 = vector.broadcast %69 : vector<1x32xf32> to vector<128x32xf32>
    %71 = arith.addf %68, %70 : vector<128x32xf32>
    %c0_24 = arith.constant 0 : index
    %c0_25 = arith.constant 0 : index
    %72 = memref.load %arg8[%c0_24, %c0_25] : memref<1x1xf32, #tpu.memory_space<smem>>
    %cst_26 = arith.constant 0.000000e+00 : f32
    %73 = vector.broadcast %cst_26 : f32 to vector<128x32xf32>
    %74 = arith.cmpf oge, %71, %73 : vector<128x32xf32>
    %75 = vector.broadcast %72 : f32 to vector<128x32xf32>
    %76 = arith.mulf %75, %71 : vector<128x32xf32>
    %77 = arith.select %74, %71, %76 : vector<128x32xi1>, vector<128x32xf32>
    %78 = vector.shape_cast %77 : vector<128x32xf32> to vector<4x32x32xf32>
    %cst_27 = arith.constant dense<0.000000e+00> : vector<4x32xf32>
    %79 = vector.multi_reduction <add>, %78, %cst_27 [2] : vector<4x32x32xf32> to vector<4x32xf32>
    %80 = vector.shape_cast %79 : vector<4x32xf32> to vector<4x32x1xf32>
    %cst_28 = arith.constant dense<0.000000e+00> : vector<4x1xf32>
    %81 = vector.multi_reduction <add>, %80, %cst_28 [1] : vector<4x32x1xf32> to vector<4x1xf32>
    %82 = vector.shape_cast %81 : vector<4x1xf32> to vector<4x1x1xf32>
    %83 = arith.mulf %78, %78 : vector<4x32x32xf32>
    %cst_29 = arith.constant dense<0.000000e+00> : vector<4x32xf32>
    %84 = vector.multi_reduction <add>, %83, %cst_29 [2] : vector<4x32x32xf32> to vector<4x32xf32>
    %85 = vector.shape_cast %84 : vector<4x32xf32> to vector<4x32x1xf32>
    %cst_30 = arith.constant dense<0.000000e+00> : vector<4x1xf32>
    %86 = vector.multi_reduction <add>, %85, %cst_30 [1] : vector<4x32x1xf32> to vector<4x1xf32>
    %87 = vector.shape_cast %86 : vector<4x1xf32> to vector<4x1x1xf32>
    %cst_31 = arith.constant 9.765625E-4 : f32
    %88 = vector.broadcast %cst_31 : f32 to vector<4x1x1xf32>
    %89 = arith.mulf %82, %88 : vector<4x1x1xf32>
    %cst_32 = arith.constant 9.765625E-4 : f32
    %90 = vector.broadcast %cst_32 : f32 to vector<4x1x1xf32>
    %91 = arith.mulf %87, %90 : vector<4x1x1xf32>
    %92 = arith.mulf %89, %89 : vector<4x1x1xf32>
    %93 = arith.subf %91, %92 : vector<4x1x1xf32>
    %cst_33 = arith.constant 0.000000e+00 : f32
    %94 = vector.broadcast %cst_33 : f32 to vector<4x1x1xf32>
    %95 = arith.maximumf %93, %94 : vector<4x1x1xf32>
    %96 = vector.broadcast %89 : vector<4x1x1xf32> to vector<4x32x32xf32>
    %97 = arith.subf %78, %96 : vector<4x32x32xf32>
    %cst_34 = arith.constant 1.000000e-10 : f32
    %98 = vector.broadcast %cst_34 : f32 to vector<4x1x1xf32>
    %99 = arith.addf %95, %98 : vector<4x1x1xf32>
    %100 = math.rsqrt %99 : vector<4x1x1xf32>
    %101 = vector.broadcast %100 : vector<4x1x1xf32> to vector<4x32x32xf32>
    %102 = arith.mulf %97, %101 : vector<4x32x32xf32>
    %103 = vector.shape_cast %102 : vector<4x32x32xf32> to vector<128x32xf32>
    %104 = arith.truncf %103 : vector<128x32xf32> to vector<128x32xbf16>
    %c0_35 = arith.constant 0 : index
    %c0_36 = arith.constant 0 : index
    %105 = vector.load %arg9[%c0_35, %c0_36] : memref<32x32xbf16, #tpu.memory_space<vmem>>, vector<32x32xbf16>
    %cst_37 = arith.constant dense<0.000000e+00> : vector<128x32xf32>
    %106 = tpu.matmul %104, %105, %cst_37 {dimension_numbers = #tpu.dot_dimension_numbers<[1], [0], [0], [1], [0, 0, 1, 1], [], []>} : vector<128x32xbf16>, vector<32x32xbf16>, vector<128x32xf32> -> vector<128x32xf32>
    %c0_38 = arith.constant 0 : index
    %c0_39 = arith.constant 0 : index
    %107 = vector.load %arg10[%c0_38, %c0_39] : memref<1x32xf32, #tpu.memory_space<vmem>>, vector<1x32xf32>
    %108 = vector.broadcast %107 : vector<1x32xf32> to vector<128x32xf32>
    %109 = arith.addf %106, %108 : vector<128x32xf32>
    %c0_40 = arith.constant 0 : index
    %c0_41 = arith.constant 0 : index
    %c0_42 = arith.constant 0 : index
    %110 = vector.load %arg1[%c0_40, %c0_41, %c0_42] : memref<4x32x16xf32, #tpu.memory_space<vmem>>, vector<4x32x16xf32>
    %111 = vector.shape_cast %110 : vector<4x32x16xf32> to vector<128x16xf32>
    %cst_43 = arith.constant 0.000000e+00 : f32
    %112 = vector.broadcast %cst_43 : f32 to vector<128x16xf32>
    %113 = tpu.concatenate %112, %111 in 1 : vector<128x16xf32>, vector<128x16xf32> -> vector<128x32xf32>
    %114 = arith.addf %109, %113 : vector<128x32xf32>
    %115 = vector.shape_cast %114 : vector<128x32xf32> to vector<4x32x32xf32>
    %c0_44 = arith.constant 0 : index
    %c0_45 = arith.constant 0 : index
    %c0_46 = arith.constant 0 : index
    %116 = vector.load %arg11[%c0_44, %c0_45, %c0_46] : memref<4x32x32xf32, #tpu.memory_space<vmem>>, vector<4x32x32xf32>
    tpu.vector_store %arg11[%c0_44, %c0_45, %c0_46], %115 {strides = array<i32>} : memref<4x32x32xf32, #tpu.memory_space<vmem>>, vector<4x32x32xf32>,
    return
  }
  func.func @transform_0(%arg0: i32) -> (i32, i32, i32) {
    %c0_i32 = arith.constant 0 : i32
    %c0_i32_0 = arith.constant 0 : i32
    %c0_i32_1 = arith.constant 0 : i32
    return %arg0, %c0_i32, %c0_i32_0 : i32, i32, i32
  }
  func.func @transform_1(%arg0: i32) -> (i32, i32) {
    %c0_i32 = arith.constant 0 : i32
    %c0_i32_0 = arith.constant 0 : i32
    %c0_i32_1 = arith.constant 0 : i32
    return %c0_i32, %c0_i32_0 : i32, i32
  }
  func.func @transform_2(%arg0: i32) -> (i32, i32) {
    %c0_i32 = arith.constant 0 : i32
    %c0_i32_0 = arith.constant 0 : i32
    %c0_i32_1 = arith.constant 0 : i32
    return %c0_i32, %c0_i32_0 : i32, i32
  }
  func.func @transform_3(%arg0: i32) -> (i32, i32) {
    %c0_i32 = arith.constant 0 : i32
    %c0_i32_0 = arith.constant 0 : i32
    %c0_i32_1 = arith.constant 0 : i32
    return %c0_i32, %c0_i32_0 : i32, i32
  }
  func.func @transform_4(%arg0: i32) -> (i32, i32) {
    %c0_i32 = arith.constant 0 : i32
    %c0_i32_0 = arith.constant 0 : i32
    %c0_i32_1 = arith.constant 0 : i32
    return %c0_i32, %c0_i32_0 : i32, i32
  }
  func.func @transform_5(%arg0: i32) -> (i32, i32) {
    %c0_i32 = arith.constant 0 : i32
    %c0_i32_0 = arith.constant 0 : i32
    %c0_i32_1 = arith.constant 0 : i32
    return %c0_i32, %c0_i32_0 : i32, i32
  }
  func.func @transform_6(%arg0: i32) -> (i32, i32) {
    %c0_i32 = arith.constant 0 : i32
    %c0_i32_0 = arith.constant 0 : i32
    %c0_i32_1 = arith.constant 0 : i32
    return %c0_i32, %c0_i32_0 : i32, i32
  }
  func.func @transform_7(%arg0: i32) -> (i32, i32) {
    %c0_i32 = arith.constant 0 : i32
    %c0_i32_0 = arith.constant 0 : i32
    %c0_i32_1 = arith.constant 0 : i32
    return %c0_i32, %c0_i32_0 : i32, i32
  }
  func.func @transform_8(%arg0: i32) -> (i32, i32) {
    %c0_i32 = arith.constant 0 : i32
    %c0_i32_0 = arith.constant 0 : i32
    %c0_i32_1 = arith.constant 0 : i32
    return %c0_i32, %c0_i32_0 : i32, i32
  }
  func.func @transform_9(%arg0: i32) -> (i32, i32) {
    %c0_i32 = arith.constant 0 : i32
    %c0_i32_0 = arith.constant 0 : i32
    %c0_i32_1 = arith.constant 0 : i32
    return %c0_i32, %c0_i32_0 : i32, i32
  }
  func.func @transform_10(%arg0: i32) -> (i32, i32, i32) {
    %c0_i32 = arith.constant 0 : i32
    %c0_i32_0 = arith.constant 0 : i32
    %c0_i32_1 = arith.constant 0 : i32
    return %arg0, %c0_i32, %c0_i32_0 : i32, i32, i32
  }
}

</mosaic_0001>

<bundles_post_ra>
// kernel: tpu_custom_call.1
= control target key start
LH: loop header
LB: loop body
LE: loop exit
PB: predicated region body
PF: predicated region fallthrough
CT: control target
= control target key end

     0   :  { %s2924_s0 = inlined_call_operand.vmem [shape: f32[8,32,16], index: 0, kind: input, shape index: {}]   ;;  %s2925_s1 = inlined_call_operand.vmem [shape: bf16[16,32], index: 1, kind: input, shape index: {}]   ;;  %s2926_s2 = inlined_call_operand.vmem [shape: f32[1,32], index: 2, kind: input, shape index: {}]   ;;  %s2927_s3 = inlined_call_operand.<no memory space> [shape: f32[1,1], index: 3, kind: input, shape index: {}]   ;;  %s2928_s4 = inlined_call_operand.vmem [shape: f32[3,32], index: 4, kind: input, shape index: {}]   ;;  %s2929_s5 = inlined_call_operand.vmem [shape: f32[3,32], index: 5, kind: input, shape index: {}]   ;;  %s2930_s6 = inlined_call_operand.vmem [shape: f32[1,32], index: 6, kind: input, shape index: {}]   ;;  %s2931_s7 = inlined_call_operand.<no memory space> [shape: f32[1,1], index: 7, kind: input, shape index: {}]   ;;  %s2932_s8 = inlined_call_operand.vmem [shape: bf16[32,32], index: 8, kind: input, shape index: {}]   ;;  %s2933_s9 = inlined_call_operand.vmem [shape: f32[1,32], index: 9, kind: input, shape index: {}]   ;;  %s2934_s10 = inlined_call_operand.hbm [shape: f32[8,32,32], index: 10, kind: output, shape index: {}]  }
   0x1   :  { %15 = sst [smem:[#allocation2]] %s2927_s3 }
   0x2   :  { %16 = sst [smem:[#allocation3]] %s2931_s7 }
   0x3   :  { %17 = vsyncpa [#allocation5], 0 }
   0x4   :  { %19 = vsyncpa [#allocation5 + $0x1], 0  ;;  %s1994_s17 = smov 0   ;;  %s1996_s18 = smov 0  }
   0x5   :  { %s1998_s19 = smov 0   ;;  %s2000_s20 = smov 0  }
   0x6 LB: > { %s2015_s3 = sadd.s32 4294967295, %s1927_s20   ;;  %s1694_s7 = sadd.s32 4294967294, %s1927_s20   ;;  %s1927_s20 = sphi %s2000_s20, %s2940_s20   ;;  %s1923_s19 = sphi %s1998_s19, %s2939_s19   ;;  %s1919_s18 = sphi %s1996_s18, %s2938_s18   ;;  %s1915_s17 = sphi %s1994_s17, %s2937_s17  }
   0x7   : > { %s2019_s21 = sadd.s32 1, %s1927_s20   ;;  %s247_s22 = sadd.s32 1, %s1923_s19 }
   0x8   : > { %s244_s23 = ssub.s32 %s1927_s20, %s2019_s21  ;;  %p257_p0 = scmp.ne.s32.totalorder %s1923_s19, %s1919_s18 }
   0x9   : > { %p245_p1 = scmp.eq.s32.totalorder %s244_s23, 0  ;;  %p258_p2 = scmp.eq.s32.totalorder %s2015_s3, 1 }
   0xa   : > { %p263_p3 = scmp.ne.s32.totalorder %s1919_s18, %s1915_s17  ;;  %p264_p4 = scmp.eq.s32.totalorder %s1694_s7, 1 }
   0xb   : > { %s2030_s24 = scalar_select %p245_p1, %s1923_s19, %s247_s22  }
   0xc   : > { %p2032_p5 = por %p258_p2, %p257_p0  ;;  %p2036_p6 = por %p264_p4, %p263_p3 }
   0xd   : > { %p1697_p7 = scmp.ge.s32.totalorder %s1927_s20, 1  ;;  %p319_p8 = scmp.lt.s32.totalorder %s1927_s20, 3 }
   0xf   : > { %p320_p9 = pnand %p1697_p7, %p319_p8 }
  0x10   : > { %s1699_s29 = sshll.u32 (!%p320_p9), %s2015_s3, 2  ;;  %s528_s14 = sld [smem:[#allocation2]] (!%p320_p9) }
  0x11   : > { %323 = sbr.rel (%p320_p9) target bundleno = 925 (0x39d), region = 60  ;;  %p359_p10 = scmp.lt.s32.totalorder (!%p320_p9), %s1699_s29, 7 }
  0x12   : > { %s2283_s23 = sld [smem:[#allocation3]] (!%p320_p9)  ;;  %s1929_s16 = smov (!%p320_p9), 16  }
  0x13   : > { %s1732_s28 = sshll.u32 (!%p320_p9), %s2015_s3, 11  ;;  %s1930_s15 = smov (!%p320_p9), [#allocation4]  }
  0x14   : > { %s2874_s12 = scalar_lea.hbm (!%p320_p9), %s2934_s10, %s1732_s28 }
  0x16   : > { %v1832_v0 = vld [vmem:[%s2925_s1] sm:$0xff]   ;;  %s2942_s29 = smov (!%p359_p10, %s1699_s29), 7  ;;  %vm406_vm0 = vcmask 130048   ;;  %v2080_v27 = vstv %s528_s14  ;;  %vm578_vm2 = vcmask 261120  }
  0x17   : > { %1752 = vmatprep.subr.bf16.mxu0 %v1832_v0  ;;  %s1730_s30 = sshll.u32 %s2942_s29, 5  ;;  %v2078_v25 = vld [vmem:[%s2926_s2] ss:$0 sm:$0xff] }
  0x18   : > { %1753 = vmatpush3.bf16.msra.mxu0 %v1832_v0  ;;  %s2049_s13 = scalar_lea.vmem %s2924_s0, %s1730_s30 }
  0x19   : > { %v367_v1 = vld [vmem:[%s2049_s13] sm:$0xff]  ;;  %v368_v2 = vld [vmem:[%s2049_s13 + $0x8] sm:$0xff]  ;;  %v369_v3 = vld [vmem:[%s2049_s13 + $0x10] sm:$0xff] }
  0x1a   : > { %v383_v4 = vpack.c.bf16 %v368_v2, %v367_v1  ;;  %v370_v5 = vld [vmem:[%s2049_s13 + $0x18] sm:$0xff]  ;;  %v371_v6 = vld [vmem:[%s2049_s13 + $0x20] sm:$0xff]  ;;  %v372_v7 = vld [vmem:[%s2049_s13 + $0x28] sm:$0xff] }
  0x1b   : > { %v384_v8 = vpack.c.bf16 %v370_v5, %v369_v3  ;;  %v385_v9 = vpack.c.bf16 %v372_v7, %v371_v6  ;;  %v373_v10 = vld [vmem:[%s2049_s13 + $0x30] sm:$0xff]  ;;  %v374_v11 = vld [vmem:[%s2049_s13 + $0x38] sm:$0xff]  ;;  %v375_v12 = vld [vmem:[%s2049_s13 + $0x40] sm:$0xff] }
  0x1c   : > { %1754 = vmatprep.mubr.msk.bf16.mxu0 %vm406_vm0, %v383_v4  ;;  %v376_v13 = vld [vmem:[%s2049_s13 + $0x48] sm:$0xff]  ;;  %v386_v14 = vpack.c.bf16 %v374_v11, %v373_v10  ;;  %v377_v16 = vld [vmem:[%s2049_s13 + $0x50] sm:$0xff]  ;;  %v378_v17 = vld [vmem:[%s2049_s13 + $0x58] sm:$0xff] }
  0x1d   : > { %1755 = vmatmul.mubr.msk.bf16.vlgmr.msra.gmra.mxu0 %vm406_vm0, %v384_v8  ;;  %v387_v15 = vpack.c.bf16 %v376_v13, %v375_v12  ;;  %v379_v18 = vld [vmem:[%s2049_s13 + $0x60] sm:$0xff]  ;;  %v380_v19 = vld [vmem:[%s2049_s13 + $0x68] sm:$0xff]  ;;  %v388_v20 = vpack.c.bf16 %v378_v17, %v377_v16  ;;  %v381_v22 = vld [vmem:[%s2049_s13 + $0x70] sm:$0xff] }
  0x1e   : > { %1758 = vmatprep.mubr.msk.bf16.mxu0 %vm406_vm0, %v385_v9  ;;  %v389_v21 = vpack.c.bf16 %v380_v19, %v379_v18  ;;  %v382_v23 = vld [vmem:[%s2049_s13 + $0x78] sm:$0xff] }
  0x1f   : > { %v390_v24 = vpack.c.bf16 %v382_v23, %v381_v22 }
  0x25   : > { %1759 = vmatmul.mubr.msk.bf16.gmra.mxu0 %vm406_vm0, %v386_v14 }
  0x26   : > { %1762 = vmatprep.mubr.msk.bf16.mxu0 %vm406_vm0, %v387_v15 }
  0x2d   : > { %1763 = vmatmul.mubr.msk.bf16.gmra.mxu0 %vm406_vm0, %v388_v20 }
  0x2e   : > { %1766 = vmatprep.mubr.msk.bf16.mxu0 %vm406_vm0, %v389_v21 }
  0x35   : > { %1767 = vmatmul.mubr.msk.bf16.gmra.mxu0 %vm406_vm0, %v390_v24 }
  0xdd   : > { %v1756_v26 = vpop.f32.mrf.mxu0 }
  0xde   : > { %v474_v28 = vadd.f32 %v1756_v26, %v2078_v25 }
  0xdf   : > { %v465_v29 = vpop.f32.mrf.mxu0 }
  0xe0   : > { %v548_v30 = vmul.f32 %v2080_v27, %v474_v28  ;;  %v466_v31 = vadd.f32 %v2078_v25, %v465_v29  ;;  %vm531_vm1 = vcmp.ge.f32.partialorder %v474_v28, 0.0 }
  0xe1   : > { %v1757_v32 = vpop.f32.mrf.mxu0 }
  0xe2   : > { %v546_v33 = vmul.f32 %v2080_v27, %v466_v31  ;;  %v2086_v34 = vsel %vm531_vm1, %v474_v28, %v548_v30  ;;  %vm529_vm3 = vcmp.ge.f32.partialorder %v466_v31, 0.0  ;;  %v477_v41 = vadd.f32 %v1757_v32, %v2078_v25 }
  0xe3   : > { %v468_v35 = vpop.f32.mrf.mxu0  ;;  %v585_v36 = vsel %vm578_vm2, %v2086_v34, 0.0  ;;  %v665_v44 = vmul.f32 %v2086_v34, %v2086_v34 }
  0xe4   : > { %v469_v37 = vadd.f32 %v2078_v25, %v468_v35  ;;  %586 = vadd.xlane.f32.xlu0 %v585_v36  ;;  %v2091_v38 = vsel %vm529_vm3, %v466_v31, %v546_v33  ;;  %v549_v51 = vmul.f32 %v2080_v27, %v477_v41  ;;  %vm532_vm7 = vcmp.ge.f32.partialorder %v477_v41, 0.0 }
  0xe5   : > { %v1760_v39 = vpop.f32.mrf.mxu0  ;;  %v579_v43 = vsel %vm578_vm2, %v2091_v38, 0.0  ;;  %v685_v54 = vsel %vm578_vm2, %v665_v44, 0.0  ;;  %v663_v55 = vmul.f32 %v2091_v38, %v2091_v38 }
  0xe6   : > { %vm530_vm4 = vcmp.ge.f32.partialorder %v469_v37, 0.0  ;;  %v547_v40 = vmul.f32 %v2080_v27, %v469_v37  ;;  %v2126_v2 = vsel %vm532_vm7, %v477_v41, %v549_v51  ;;  %v490_v8 = vadd.f32 %v1760_v39, %v2078_v25 }
  0xe7   : > { %v481_v42 = vpop.f32.mrf.mxu0  ;;  %v679_v63 = vsel %vm578_vm2, %v663_v55, 0.0  ;;  %v588_v7 = vsel %vm578_vm2, %v2126_v2, 0.0  ;;  %v666_v17 = vmul.f32 %v2126_v2, %v2126_v2 }
  0xe8   : > { %v482_v45 = vadd.f32 %v2078_v25, %v481_v42  ;;  %580 = vadd.xlane.f32.xlu0 %v579_v43  ;;  %v2100_v46 = vsel %vm530_vm4, %v469_v37, %v547_v40  ;;  %v552_v18 = vmul.f32 %v2080_v27, %v490_v8  ;;  %vm535_vm11 = vcmp.ge.f32.partialorder %v490_v8, 0.0 }
  0xe9   : > { %v1761_v47 = vpop.f32.mrf.mxu0  ;;  %v664_v48 = vmul.f32 %v2100_v46, %v2100_v46  ;;  %v582_v16 = vsel %vm578_vm2, %v2100_v46, 0.0  ;;  %v688_v26 = vsel %vm578_vm2, %v666_v17, 0.0 }
  0xea   : > { %vm533_vm5 = vcmp.ge.f32.partialorder %v482_v45, 0.0  ;;  %v550_v49 = vmul.f32 %v2080_v27, %v482_v45  ;;  %v493_v50 = vadd.f32 %v1761_v47, %v2078_v25  ;;  %v2160_v30 = vsel %vm535_vm11, %v490_v8, %v552_v18 }
  0xeb   : > { %v484_v52 = vpop.f32.mrf.mxu0  ;;  %v682_v53 = vsel %vm578_vm2, %v664_v48, 0.0  ;;  %v597_v33 = vsel %vm578_vm2, %v2160_v30, 0.0  ;;  %v669_v41 = vmul.f32 %v2160_v30, %v2160_v30 }
  0xec   : > { %v553_v56 = vmul.f32 %v2080_v27, %v493_v50  ;;  %v485_v57 = vadd.f32 %v2078_v25, %v484_v52  ;;  %683 = vadd.xlane.f32.xlu1 %v682_v53  ;;  %686 = vadd.xlane.f32.xlu0 %v685_v54  ;;  %v2113_v58 = vsel %vm533_vm5, %v482_v45, %v550_v49  ;;  %vm536_vm6 = vcmp.ge.f32.partialorder %v493_v50, 0.0 }
  0xed   : > { %v2115_v59 = vpop.f32.mrf.mxu0  ;;  %v667_v60 = vmul.f32 %v2113_v58, %v2113_v58  ;;  %v591_v40 = vsel %vm578_vm2, %v2113_v58, 0.0  ;;  %v697_v45 = vsel %vm578_vm2, %v669_v41, 0.0 }
  0xee   : > { %v551_v0 = vmul.f32 %v2080_v27, %v485_v57  ;;  %v2124_v1 = vsel %vm536_vm6, %v493_v50, %v553_v56  ;;  %vm534_vm8 = vcmp.ge.f32.partialorder %v485_v57, 0.0  ;;  %v506_v54 = vadd.f32 %v2115_v59, %v2078_v25 }
  0xef   : > { %v2119_v61 = vpop.f32.mrf.mxu0  ;;  %v691_v62 = vsel %vm578_vm2, %v667_v60, 0.0  ;;  %v600_v6 = vsel %vm578_vm2, %v2124_v1, 0.0 }
  0xf0   : > { %692 = vadd.xlane.f32.xlu1 %v691_v62  ;;  %680 = vadd.xlane.f32.xlu0 %v679_v63  ;;  %v2137_v10 = vsel %vm534_vm8, %v485_v57, %v551_v0  ;;  %v498_v48 = vadd.f32 %v2078_v25, %v2119_v61  ;;  %v556_v62 = vmul.f32 %v2080_v27, %v506_v54  ;;  %vm539_vm1 = vcmp.ge.f32.partialorder %v506_v54, 0.0 }
  0xf1   : > { %v1765_v3 = vpop.f32.mrf.mxu0  ;;  %v594_v15 = vsel %vm578_vm2, %v2137_v10, 0.0  ;;  %v668_v47 = vmul.f32 %v2137_v10, %v2137_v10 }
  0xf2   : > { %v509_v4 = vadd.f32 %v1765_v3, %v2078_v25  ;;  %v554_v55 = vmul.f32 %v2080_v27, %v498_v48  ;;  %vm537_vm15 = vcmp.ge.f32.partialorder %v498_v48, 0.0  ;;  %v670_v3 = vmul.f32 %v2124_v1, %v2124_v1 }
  0xf3   : > { %v2129_v5 = vpop.f32.mrf.mxu0  ;;  %v694_v51 = vsel %vm578_vm2, %v668_v47, 0.0 }
  0xf4   : > { %v557_v9 = vmul.f32 %v2080_v27, %v509_v4  ;;  %601 = vadd.xlane.f32.xlu1 %v600_v6  ;;  %589 = vadd.xlane.f32.xlu0 %v588_v7  ;;  %vm540_vm9 = vcmp.ge.f32.partialorder %v509_v4, 0.0  ;;  %v501_v56 = vadd.f32 %v2078_v25, %v2129_v5  ;;  %v2205_v59 = vsel %vm537_vm15, %v498_v48, %v554_v55 }
  0xf5   : > { %v1768_v11 = vpop.f32.mrf.mxu0  ;;  %v603_v0 = vsel %vm578_vm2, %v2205_v59, 0.0 }
  0xf6   : > { %v522_v12 = vadd.f32 %v1768_v11, %v2078_v25  ;;  %v2140_v13 = vsel %vm540_vm9, %v509_v4, %v557_v9  ;;  %v555_v63 = vmul.f32 %v2080_v27, %v501_v56  ;;  %vm538_vm3 = vcmp.ge.f32.partialorder %v501_v56, 0.0 }
  0xf7   : > { %v513_v14 = vpop.f32.mrf.mxu0  ;;  %v2212_v4 = vsel %vm539_vm1, %v506_v54, %v556_v62  ;;  %v671_v11 = vmul.f32 %v2205_v59, %v2205_v59  ;;  %v674_v17 = vmul.f32 %v2140_v13, %v2140_v13 }
  0xf8   : > { %v560_v19 = vmul.f32 %v2080_v27, %v522_v12  ;;  %v514_v20 = vadd.f32 %v2078_v25, %v513_v14  ;;  %595 = vadd.xlane.f32.xlu1 %v594_v15  ;;  %583 = vadd.xlane.f32.xlu0 %v582_v16  ;;  %vm543_vm10 = vcmp.ge.f32.partialorder %v522_v12, 0.0  ;;  %v2214_v5 = vsel %vm538_vm3, %v501_v56, %v555_v63 }
  0xf9   : > { %v1769_v21 = vpop.f32.mrf.mxu0  ;;  %v609_v6 = vsel %vm578_vm2, %v2212_v4, 0.0  ;;  %v672_v7 = vmul.f32 %v2214_v5, %v2214_v5  ;;  %v606_v8 = vsel %vm578_vm2, %v2214_v5, 0.0  ;;  %v703_v14 = vsel %vm578_vm2, %v671_v11, 0.0 }
  0xfa   : > { %v558_v22 = vmul.f32 %v2080_v27, %v514_v20  ;;  %v2152_v23 = vsel %vm543_vm10, %v522_v12, %v560_v19  ;;  %vm541_vm12 = vcmp.ge.f32.partialorder %v514_v20, 0.0  ;;  %v525_v28 = vadd.f32 %v1769_v21, %v2078_v25 }
  0xfb   : > { %v621_v24 = vsel %vm578_vm2, %v2152_v23, 0.0  ;;  %v516_v31 = vpop.f32.mrf.mxu0  ;;  %v677_v35 = vmul.f32 %v2152_v23, %v2152_v23  ;;  %v706_v9 = vsel %vm578_vm2, %v672_v7, 0.0  ;;  %v673_v12 = vmul.f32 %v2212_v4, %v2212_v4 }
  0xfc   : > { %622 = vadd.xlane.f32.xlu1 %v621_v24  ;;  %689 = vadd.xlane.f32.xlu0 %v688_v26  ;;  %v2158_v29 = vsel %vm541_vm12, %v514_v20, %v558_v22  ;;  %v561_v36 = vmul.f32 %v2080_v27, %v525_v28  ;;  %v517_v37 = vadd.f32 %v2078_v25, %v516_v31  ;;  %vm544_vm13 = vcmp.ge.f32.partialorder %v525_v28, 0.0 }
  0xfd   : > { %v615_v32 = vsel %vm578_vm2, %v2158_v29, 0.0  ;;  %v721_v39 = vsel %vm578_vm2, %v677_v35, 0.0  ;;  %v675_v53 = vmul.f32 %v2158_v29, %v2158_v29  ;;  %v709_v15 = vsel %vm578_vm2, %v673_v12, 0.0 }
  0xfe   : > { %v559_v42 = vmul.f32 %v2080_v27, %v517_v37  ;;  %v2176_v43 = vsel %vm544_vm13, %v525_v28, %v561_v36  ;;  %vm542_vm14 = vcmp.ge.f32.partialorder %v517_v37, 0.0  ;;  %v700_v27 = vsel %vm578_vm2, %v670_v3, 0.0 }
  0xff   : > { %v624_v44 = vsel %vm578_vm2, %v2176_v43, 0.0  ;;  %v678_v52 = vmul.f32 %v2176_v43, %v2176_v43  ;;  %v715_v60 = vsel %vm578_vm2, %v675_v53, 0.0  ;;  %v612_v16 = vsel %vm578_vm2, %v2140_v13, 0.0 }
 0x100   : > { %616 = vadd.xlane.f32.xlu1 %v615_v32  ;;  %598 = vadd.xlane.f32.xlu0 %v597_v33  ;;  %v2185_v49 = vsel %vm542_vm14, %v517_v37, %v559_v42  ;;  %v712_v18 = vsel %vm578_vm2, %v674_v17, 0.0 }
 0x101   : > { %v618_v50 = vsel %vm578_vm2, %v2185_v49, 0.0  ;;  %v724_v57 = vsel %vm578_vm2, %v678_v52, 0.0  ;;  %v676_v61 = vmul.f32 %v2185_v49, %v2185_v49 }
 0x103   : > { %v718_v25 = vsel %vm578_vm2, %v676_v61, 0.0 }
 0x104   : > { %722 = vadd.xlane.f32.xlu1 %v721_v39  ;;  %592 = vadd.xlane.f32.xlu0 %v591_v40 }
 0x108   : > { %625 = vadd.xlane.f32.xlu1 %v624_v44  ;;  %698 = vadd.xlane.f32.xlu0 %v697_v45 }
 0x10c   : > { %619 = vadd.xlane.f32.xlu1 %v618_v50  ;;  %695 = vadd.xlane.f32.xlu0 %v694_v51 }
 0x110   : > { %725 = vadd.xlane.f32.xlu1 %v724_v57  ;;  %716 = vadd.xlane.f32.xlu0 %v715_v60 }
 0x114   : > { %719 = vadd.xlane.f32.xlu1 %v718_v25  ;;  %604 = vadd.xlane.f32.xlu0 %v603_v0 }
 0x118   : > { %701 = vadd.xlane.f32.xlu1 %v700_v27  ;;  %610 = vadd.xlane.f32.xlu0 %v609_v6 }
 0x11c   : > { %607 = vadd.xlane.f32.xlu1 %v606_v8  ;;  %707 = vadd.xlane.f32.xlu0 %v706_v9 }
 0x120   : > { %704 = vadd.xlane.f32.xlu1 %v703_v14  ;;  %710 = vadd.xlane.f32.xlu0 %v709_v15 }
 0x124   : > { %613 = vadd.xlane.f32.xlu1 %v612_v16 }
 0x128   : > { %713 = vadd.xlane.f32.xlu1 %v712_v18 }
 0x16d   : > { %v587_v19 = vpop.xlane.xlu0 %586 }
 0x171   : > { %v581_v20 = vpop.xlane.xlu0 %580 }
 0x175   : > { %v684_v21 = vpop.xlane.xlu1 %683  ;;  %v687_v22 = vpop.xlane.xlu0 %686 }
 0x179   : > { %v693_v24 = vpop.xlane.xlu1 %692  ;;  %v681_v26 = vpop.xlane.xlu0 %680 }
 0x17a   : > { %v727_v32 = vadd.f32 %v684_v21, %v681_v26 }
 0x17c   : > { %v728_v39 = vadd.f32 %v727_v32, %v687_v22 }
 0x17d   : > { %v602_v28 = vpop.xlane.xlu1 %601  ;;  %v590_v31 = vpop.xlane.xlu0 %589 }
 0x181   : > { %v596_v33 = vpop.xlane.xlu1 %595  ;;  %v584_v35 = vpop.xlane.xlu0 %583 }
 0x182   : > { %v627_v36 = vadd.f32 %v584_v35, %v581_v20 }
 0x184   : > { %v628_v37 = vadd.f32 %v627_v36, %v587_v19 }
 0x185   : > { %v623_v40 = vpop.xlane.xlu1 %622  ;;  %v690_v41 = vpop.xlane.xlu0 %689 }
 0x186   : > { %v629_v42 = vadd.f32 %v628_v37, %v590_v31  ;;  %v729_v44 = vadd.f32 %v728_v39, %v690_v41 }
 0x188   : > { %v630_v45 = vrot.slane %v629_v42, 4  ;;  %v730_v47 = vrot.slane %v729_v44, 4 }
 0x189   : > { %v617_v48 = vpop.xlane.xlu1 %616  ;;  %v599_v50 = vpop.xlane.xlu0 %598 }
 0x18a   : > { %v631_v51 = vadd.f32 %v630_v45, %v629_v42  ;;  %v731_v52 = vadd.f32 %v730_v47, %v729_v44 }
 0x18c   : > { %v632_v53 = vrot.slane %v631_v51, 2  ;;  %v732_v54 = vrot.slane %v731_v52, 2 }
 0x18d   : > { %v723_v55 = vpop.xlane.xlu1 %722  ;;  %v593_v56 = vpop.xlane.xlu0 %592 }
 0x18e   : > { %v633_v57 = vadd.f32 %v632_v53, %v631_v51  ;;  %v733_v60 = vadd.f32 %v732_v54, %v731_v52  ;;  %v636_v61 = vadd.f32 %v596_v33, %v593_v56 }
 0x190   : > { %v634_v62 = vrot.slane %v633_v57, 1  ;;  %v734_v63 = vrot.slane %v733_v60, 1  ;;  %v637_v25 = vadd.f32 %v636_v61, %v599_v50  ;;  %v823_v61 = vld [vmem:[%s2928_s4] sm:$0x7] }
 0x191   : > { %v626_v0 = vpop.xlane.xlu1 %625  ;;  %v699_v3 = vpop.xlane.xlu0 %698 }
 0x192   : > { %v635_v27 = vadd.f32 %v634_v62, %v633_v57  ;;  %v735_v6 = vadd.f32 %v734_v63, %v733_v60  ;;  %v638_v7 = vadd.f32 %v637_v25, %v602_v28  ;;  %v825_v28 = vlaneseq }
 0x194   : > { %v2235_v8 = vmul.f32 0.0009765625, %v635_v27  ;;  %v639_v9 = vrot.slane %v638_v7, 4  ;;  %v767_v15 = vmul.f32 0.0009765625, %v735_v6  ;;  %v2239_v45 = vshrl.u32 %v825_v28, 7 }
 0x195   : > { %v620_v11 = vpop.xlane.xlu1 %619  ;;  %v696_v12 = vpop.xlane.xlu0 %695 }
 0x196   : > { %v771_v14 = vmul.f32 %v2235_v8, %v2235_v8  ;;  %v640_v16 = vadd.f32 %v639_v9, %v638_v7  ;;  %v654_v17 = vadd.f32 %v620_v11, %v617_v48  ;;  %v736_v35 = vadd.f32 %v696_v12, %v693_v24 }
 0x197   : > { %v909_v24 = vsub.s32 1, %v2239_v45  ;;  %vm846_vm4 = vcmp.lt.s32.totalorder %v2239_v45, 2  ;;  %vm959_vm5 = vcmp.lt.s32.totalorder %v2239_v45, 6  ;;  %v786_v28 = vsub.f32 %v2126_v2, %v2235_v8 }
 0x198   : > { %v775_v18 = vsub.f32 %v767_v15, %v771_v14  ;;  %v641_v19 = vrot.slane %v640_v16, 2  ;;  %v655_v20 = vadd.f32 %v654_v17, %v623_v40  ;;  %v737_v48 = vadd.f32 %v736_v35, %v699_v3 }
 0x199   : > { %v726_v21 = vpop.xlane.xlu1 %725  ;;  %v717_v22 = vpop.xlane.xlu0 %716  ;;  %v2248_v6 = vrot.slane %v823_v61, %v909_v24  ;;  %v982_v14 = vsub.s32 2, %v2239_v45  ;;  %vm863_vm9 = vcmp.ge.s32.totalorder %v2239_v45, 2 }
 0x19a   : > { %v779_v26 = vmax.f32 %v775_v18, 0.0  ;;  %v642_v31 = vadd.f32 %v641_v19, %v640_v16  ;;  %v656_v32 = vadd.f32 %v655_v20, %v626_v0  ;;  %v783_v18 = vsub.f32 %v2091_v38, %v2235_v8 }
 0x19b   : > { %v784_v19 = vsub.f32 %v2100_v46, %v2235_v8 }
 0x19c   : > { %v799_v33 = vadd.f32 1e-10, %v779_v26  ;;  %v657_v36 = vrot.slane %v656_v32, 4  ;;  %v643_v42 = vrot.slane %v642_v31, 1 }
 0x19d   : > { %v720_v37 = vpop.xlane.xlu1 %719  ;;  %v605_v39 = vpop.xlane.xlu0 %604 }
 0x19e   : > { %1835 = vrsqrt.f32 %v799_v33  ;;  %v754_v41 = vadd.f32 %v720_v37, %v717_v22  ;;  %v658_v44 = vadd.f32 %v657_v36, %v656_v32  ;;  %v644_v54 = vadd.f32 %v643_v42, %v642_v31 }
 0x19f   : > { %v785_v32 = vsub.f32 %v2086_v34, %v2235_v8 }
 0x1a0   : > { %v755_v47 = vadd.f32 %v754_v41, %v723_v55  ;;  %v659_v40 = vrot.slane %v658_v44, 2  ;;  %v869_v55 = vsub.s32 0, %v2239_v45  ;;  %v2246_v3 = vmul.f32 0.0009765625, %v644_v54 }
 0x1a1   : > { %v702_v50 = vpop.xlane.xlu1 %701  ;;  %v611_v53 = vpop.xlane.xlu0 %610 }
 0x1a2   : > { %v756_v51 = vadd.f32 %v755_v47, %v726_v21  ;;  %v738_v52 = vadd.f32 %v737_v48, %v702_v50  ;;  %v660_v56 = vadd.f32 %v659_v40, %v658_v44  ;;  %v2256_v17 = vrot.slane %v823_v61, %v869_v55 }
 0x1a3   : > { %v772_v26 = vmul.f32 %v2246_v3, %v2246_v3 }
 0x1a4   : > { %v757_v57 = vrot.slane %v756_v51, 4  ;;  %v739_v60 = vrot.slane %v738_v52, 4  ;;  %v661_v62 = vrot.slane %v660_v56, 1 }
 0x1a5   : > { %v608_v63 = vpop.xlane.xlu1 %607  ;;  %v708_v12 = vpop.xlane.xlu0 %707 }
 0x1a6   : > { %v758_v25 = vadd.f32 %v757_v57, %v756_v51  ;;  %v740_v0 = vadd.f32 %v739_v60, %v738_v52  ;;  %v662_v27 = vadd.f32 %v661_v62, %v660_v56  ;;  %v645_v11 = vadd.f32 %v608_v63, %v605_v39 }
 0x1a7   : > { %v2294_v62 = vrot.slane %v823_v61, %v982_v14 }
 0x1a8   : > { %v759_v7 = vrot.slane %v758_v25, 2  ;;  %v741_v9 = vrot.slane %v740_v0, 2  ;;  %v2251_v15 = vmul.f32 0.0009765625, %v662_v27  ;;  %v646_v36 = vadd.f32 %v645_v11, %v611_v53 }
 0x1a9   : > { %v705_v16 = vpop.xlane.xlu1 %704  ;;  %v711_v47 = vpop.xlane.xlu0 %710 }
 0x1aa   : > { %v760_v20 = vadd.f32 %v759_v7, %v758_v25  ;;  %v742_v21 = vadd.f32 %v741_v9, %v740_v0  ;;  %v745_v31 = vadd.f32 %v708_v12, %v705_v16  ;;  %v774_v46 = vmul.f32 %v2251_v15, %v2251_v15 }
 0x1ab   : > { %v1836_v22 = vpop.eup %1835 }
 0x1ac   : > { %v761_v33 = vrot.slane %v760_v20, 1  ;;  %v743_v35 = vrot.slane %v742_v21, 1  ;;  %v2269_v38 = vmul.f32 %v1836_v22, %v784_v19  ;;  %v2273_v39 = vmul.f32 %v1836_v22, %v785_v32 }
 0x1ad   : > { %v614_v37 = vpop.xlane.xlu1 %613  ;;  %v2275_v41 = vmul.f32 %v1836_v22, %v786_v28  ;;  %v2277_v42 = vmul.f32 %v1836_v22, %v783_v18  ;;  %v746_v8 = vadd.f32 %v745_v31, %v711_v47 }
 0x1ae   : > { %v762_v44 = vadd.f32 %v761_v33, %v760_v20  ;;  %v744_v34 = vadd.f32 %v743_v35, %v742_v21  ;;  %v647_v48 = vadd.f32 %v646_v36, %v614_v37  ;;  %v831_v2 = vrot.slane %v2269_v38, 6  ;;  %v2315_v36 = vld [vmem:[%s2930_s6] ss:$0 sm:$0xff] }
 0x1af   : > { %v832_v40 = vrot.slane %v2273_v39, 6  ;;  %v945_v50 = vrot.slane %v2273_v39, 2  ;;  %v946_v51 = vrot.slane %v2275_v41, 2  ;;  %v830_v56 = vrot.slane %v2277_v42, 6 }
 0x1b0   : > { %v770_v52 = vmul.f32 0.0009765625, %v762_v44  ;;  %v768_v53 = vmul.f32 0.0009765625, %v744_v34  ;;  %v648_v54 = vrot.slane %v647_v48, 4  ;;  %v944_v63 = vrot.slane %v2269_v38, 2 }
 0x1b1   : > { %v714_v24 = vpop.xlane.xlu1 %713  ;;  %v860_v57 = vsel %vm846_vm4, %v831_v2, %v832_v40  ;;  %v972_v60 = vsel %vm959_vm5, %v945_v50, %v946_v51  ;;  %v913_v11 = vmul.f32 %v2248_v6, %v2273_v39  ;;  %v861_v12 = vsel %vm846_vm4, %v830_v56, %v831_v2 }
 0x1b2   : > { %v778_v25 = vsub.f32 %v770_v52, %v774_v46  ;;  %v776_v0 = vsub.f32 %v768_v53, %v772_v26  ;;  %v649_v27 = vadd.f32 %v648_v54, %v647_v48  ;;  %v747_v7 = vadd.f32 %v746_v8, %v714_v24  ;;  %v824_v24 = vld [vmem:[%s2929_s5] sm:$0x7] }
 0x1b3   : > { %v873_v9 = vmul.f32 %v2256_v17, %v860_v57  ;;  %v973_v61 = vsel %vm959_vm5, %v944_v63, %v945_v50  ;;  %v986_v22 = vmul.f32 %v2294_v62, %v972_v60  ;;  %v872_v26 = vmul.f32 %v2256_v17, %v861_v12 }
 0x1b4   : > { %v782_v16 = vmax.f32 %v778_v25, 0.0  ;;  %v780_v18 = vmax.f32 %v776_v0, 0.0  ;;  %v650_v19 = vrot.slane %v649_v27, 2  ;;  %v748_v20 = vrot.slane %v747_v7, 4 }
 0x1b5   : > { %v929_v21 = vadd.f32 %v913_v11, %v873_v9  ;;  %v912_v31 = vmul.f32 %v2248_v6, %v2269_v38  ;;  %v2318_v37 = vstv %s2283_s23  ;;  %v985_v44 = vmul.f32 %v2294_v62, %v973_v61 }
 0x1b6   : > { %v802_v32 = vadd.f32 1e-10, %v782_v16  ;;  %v800_v28 = vadd.f32 1e-10, %v780_v18  ;;  %v651_v33 = vadd.f32 %v650_v19, %v649_v27  ;;  %v749_v35 = vadd.f32 %v748_v20, %v747_v7 }
 0x1b7   : > { %v1022_v46 = vadd.f32 %v986_v22, %v929_v21  ;;  %v928_v39 = vadd.f32 %v912_v31, %v872_v26  ;;  %v833_v48 = vrot.slane %v2275_v41, 6  ;;  %v2338_v7 = vadd.s32 24, %v2239_v45 }
 0x1b8   : > { %1837 = vrsqrt.f32 %v802_v32  ;;  %v652_v34 = vrot.slane %v651_v33, 1  ;;  %v750_v47 = vrot.slane %v749_v35, 2  ;;  %v2342_v9 = vrot.slane %v824_v24, %v982_v14 }
 0x1b9   : > { %1839 = vrsqrt.f32 %v800_v28  ;;  %v1045_v2 = vadd.f32 %v2315_v36, %v1022_v46  ;;  %v1021_v8 = vadd.f32 %v985_v44, %v928_v39  ;;  %v859_v60 = vsel %vm846_vm4, %v832_v40, %v833_v48 }
 0x1ba   : > { %v653_v50 = vadd.f32 %v652_v34, %v651_v33  ;;  %v751_v52 = vadd.f32 %v750_v47, %v749_v35  ;;  %v943_v11 = vrot.slane %v2277_v42, 2  ;;  %v2351_v16 = vrot.slane %v824_v24, %v869_v55 }
 0x1bb   : > { %vm1062_vm6 = vcmp.ge.f32.partialorder %v1045_v2, 0.0  ;;  %v1079_v53 = vmul.f32 %v2318_v37, %v1045_v2  ;;  %v1044_v54 = vadd.f32 %v2315_v36, %v1021_v8  ;;  %v787_v18 = vsub.f32 %v2113_v58, %v2246_v3 }
 0x1bc   : > { %v752_v57 = vrot.slane %v751_v52, 1  ;;  %v2332_v25 = vmul.f32 0.0009765625, %v653_v50  ;;  %v874_v20 = vmul.f32 %v2256_v17, %v859_v60  ;;  %v788_v21 = vsub.f32 %v2137_v10, %v2246_v3 }
 0x1bd   : > { %v2334_v0 = vsel %vm1062_vm6, %v1045_v2, %v1079_v53  ;;  %vm1061_vm7 = vcmp.ge.f32.partialorder %v1044_v54, 0.0  ;;  %v1078_v27 = vmul.f32 %v2318_v37, %v1044_v54  ;;  %v789_v58 = vsub.f32 %v2160_v30, %v2246_v3 }
 0x1be   : > { %v753_v12 = vadd.f32 %v752_v57, %v751_v52  ;;  %v1115_v40 = vsel %vm578_vm2, %v2334_v0, 0.0  ;;  %v773_v55 = vmul.f32 %v2332_v25, %v2332_v25  ;;  %v1195_v26 = vmul.f32 %v2334_v0, %v2334_v0 }
 0x1bf   : > { %v2347_v61 = vsel %vm1061_vm7, %v1044_v54, %v1078_v27  ;;  %1116 = vadd.xlane.f32.xlu0 %v1115_v40  ;;  %v914_v31 = vmul.f32 %v2248_v6, %v2275_v41  ;;  %v790_v32 = vsub.f32 %v2124_v1, %v2246_v3  ;;  %v974_v10 = vsel %vm959_vm5, %v943_v11, %v944_v63 }
 0x1c0   : > { %v1112_v14 = vsel %vm578_vm2, %v2347_v61, 0.0  ;;  %v1194_v19 = vmul.f32 %v2347_v61, %v2347_v61  ;;  %v769_v22 = vmul.f32 0.0009765625, %v753_v12  ;;  %v795_v28 = vsub.f32 %v2158_v29, %v2251_v15 }
 0x1c1   : > { %1113 = vadd.xlane.f32.xlu1 %v1112_v14  ;;  %v798_v30 = vsub.f32 %v2176_v43, %v2251_v15  ;;  %vm979_vm8 = vcmp.lt.s32.totalorder %v2338_v7, 30  ;;  %v930_v1 = vadd.f32 %v914_v31, %v874_v20  ;;  %v2386_v3 = vmul.f32 %v2248_v6, %v2277_v42 }
 0x1c2   : > { %v777_v33 = vsub.f32 %v769_v22, %v773_v55  ;;  %v1212_v35 = vsel %vm578_vm2, %v1194_v19, 0.0  ;;  %v796_v38 = vsub.f32 %v2185_v49, %v2251_v15  ;;  %v797_v29 = vsub.f32 %v2152_v23, %v2251_v15 }
 0x1c3   : > { %1213 = vadd.xlane.f32.xlu0 %v1212_v35  ;;  %v791_v43 = vsub.f32 %v2205_v59, %v2332_v25  ;;  %v792_v46 = vsub.f32 %v2214_v5, %v2332_v25  ;;  %v2398_v44 = vmul.f32 %v2294_v62, %v974_v10  ;;  %v793_v49 = vsub.f32 %v2212_v4, %v2332_v25 }
 0x1c4   : > { %v781_v39 = vmax.f32 %v777_v33, 0.0  ;;  %v794_v23 = vsub.f32 %v2140_v13, %v2332_v25  ;;  %v1215_v15 = vsel %vm578_vm2, %v1195_v26, 0.0 }
 0x1c5   : > { %v1838_v63 = vpop.eup %1837 }
 0x1c6   : > { %v1840_v34 = vpop.eup %1839  ;;  %v2405_v47 = vmul.f32 %v1838_v63, %v798_v30  ;;  %v801_v2 = vadd.f32 1e-10, %v781_v39  ;;  %v2409_v54 = vmul.f32 %v1838_v63, %v795_v28  ;;  %v2411_v24 = vmul.f32 %v1838_v63, %v796_v38 }
 0x1c7   : > { %v811_v8 = vmul.f32 %v1840_v34, %v787_v18  ;;  %v812_v50 = vmul.f32 %v1840_v34, %v788_v21  ;;  %v813_v52 = vmul.f32 %v1840_v34, %v789_v58  ;;  %1216 = vadd.xlane.f32.xlu0 %v1215_v15  ;;  %v2407_v53 = vmul.f32 %v1840_v34, %v790_v32 }
 0x1c8   : > { %v2413_v57 = vmul.f32 %v1838_v63, %v797_v29  ;;  %1841 = vrsqrt.f32 %v801_v2 }
 0x1c9   : > { %v947_v60 = vrot.slane %v811_v8, 2  ;;  %v835_v27 = vrot.slane %v812_v50, 6  ;;  %v836_v12 = vrot.slane %v813_v52, 6  ;;  %v917_v40 = vmul.f32 %v2248_v6, %v813_v52 }
 0x1ca   : > { %v949_v14 = vrot.slane %v813_v52, 2  ;;  %v950_v18 = vrot.slane %v2407_v53, 2  ;;  %v834_v19 = vrot.slane %v811_v8, 6  ;;  %v916_v22 = vmul.f32 %v2248_v6, %v812_v50 }
 0x1cb   : > { %v971_v20 = vsel %vm959_vm5, %v946_v51, %v947_v60  ;;  %v856_v21 = vsel %vm846_vm4, %v835_v27, %v836_v12  ;;  %v948_v55 = vrot.slane %v812_v50, 2  ;;  %v915_v34 = vmul.f32 %v2248_v6, %v811_v8 }
 0x1cc   : > { %v987_v58 = vmul.f32 %v2294_v62, %v971_v20  ;;  %v877_v26 = vmul.f32 %v2256_v17, %v856_v21  ;;  %v968_v31 = vsel %vm959_vm5, %v949_v14, %v950_v18  ;;  %v857_v32 = vsel %vm846_vm4, %v834_v19, %v835_v27 }
 0x1cd   : > { %v990_v51 = vmul.f32 %v2294_v62, %v968_v31  ;;  %v876_v10 = vmul.f32 %v2256_v17, %v857_v32  ;;  %v969_v28 = vsel %vm959_vm5, %v948_v55, %v949_v14  ;;  %v858_v30 = vsel %vm846_vm4, %v833_v48, %v834_v19 }
 0x1ce   : > { %v1007_v33 = vsel %vm979_vm8, %v987_v58, %v2342_v9  ;;  %v933_v35 = vadd.f32 %v917_v40, %v877_v26  ;;  %v989_v38 = vmul.f32 %v2294_v62, %v969_v28  ;;  %v875_v29 = vmul.f32 %v2256_v17, %v858_v30 }
 0x1cf   : > { %v1023_v63 = vadd.f32 %v1007_v33, %v930_v1  ;;  %v932_v39 = vadd.f32 %v916_v22, %v876_v10  ;;  %v970_v15 = vsel %vm959_vm5, %v947_v60, %v948_v55  ;;  %v837_v2 = vrot.slane %v2407_v53, 6 }
 0x1d0   : > { %v1026_v41 = vadd.f32 %v990_v51, %v933_v35  ;;  %v895_v48 = vsel %vm863_vm9, %v875_v29, %v2351_v16  ;;  %v845_v50 = vrot.slane %v2405_v47, 6  ;;  %v988_v1 = vmul.f32 %v2294_v62, %v970_v15 }
 0x1d1   : > { %v1046_v52 = vadd.f32 %v2315_v36, %v1023_v63  ;;  %v1025_v27 = vadd.f32 %v989_v38, %v932_v39  ;;  %v931_v40 = vadd.f32 %v915_v34, %v895_v48  ;;  %v855_v60 = vsel %vm846_vm4, %v836_v12, %v837_v2 }
 0x1d2   : > { %v1049_v8 = vadd.f32 %v2315_v36, %v1026_v41  ;;  %v955_v14 = vrot.slane %v2409_v54, 2  ;;  %v842_v19 = vrot.slane %v2409_v54, 6  ;;  %v878_v58 = vmul.f32 %v2256_v17, %v855_v60 }
 0x1d3   : > { %vm1063_vm10 = vcmp.ge.f32.partialorder %v1046_v52, 0.0  ;;  %v1080_v20 = vmul.f32 %v2318_v37, %v1046_v52  ;;  %v1048_v21 = vadd.f32 %v2315_v36, %v1025_v27  ;;  %v1024_v22 = vadd.f32 %v988_v1, %v931_v40 }
 0x1d4   : > { %vm1066_vm11 = vcmp.ge.f32.partialorder %v1049_v8, 0.0  ;;  %v1083_v55 = vmul.f32 %v2318_v37, %v1049_v8  ;;  %v862_v12 = vsel %vm846_vm4, %v845_v50, %v830_v56  ;;  %v918_v33 = vmul.f32 %v2248_v6, %v2407_v53 }
 0x1d5   : > { %v2470_v26 = vsel %vm1063_vm10, %v1046_v52, %v1080_v20  ;;  %vm1065_vm12 = vcmp.ge.f32.partialorder %v1048_v21, 0.0  ;;  %v1082_v31 = vmul.f32 %v2318_v37, %v1048_v21  ;;  %v1047_v32 = vadd.f32 %v2315_v36, %v1024_v22  ;;  %v1842_v51 = vpop.eup %1841 }
 0x1d6   : > { %v1118_v10 = vsel %vm578_vm2, %v2470_v26, 0.0  ;;  %v2476_v28 = vsel %vm1066_vm11, %v1049_v8, %v1083_v55  ;;  %v1196_v30 = vmul.f32 %v2470_v26, %v2470_v26  ;;  %v934_v39 = vadd.f32 %v918_v33, %v878_v58 }
 0x1d7   : > { %1119 = vadd.xlane.f32.xlu1 %v1118_v10  ;;  %v1127_v56 = vsel %vm578_vm2, %v2476_v28, 0.0  ;;  %v2484_v35 = vsel %vm1065_vm12, %v1048_v21, %v1082_v31  ;;  %vm1064_vm13 = vcmp.ge.f32.partialorder %v1047_v32, 0.0  ;;  %v1081_v38 = vmul.f32 %v2318_v37, %v1047_v32 }
 0x1d8   : > { %1128 = vadd.xlane.f32.xlu0 %v1127_v56  ;;  %v1124_v29 = vsel %vm578_vm2, %v2484_v35, 0.0  ;;  %v1198_v63 = vmul.f32 %v2484_v35, %v2484_v35  ;;  %v871_v34 = vmul.f32 %v2256_v17, %v862_v12  ;;  %v815_v41 = vmul.f32 %v1842_v51, %v791_v43 }
 0x1d9   : > { %v2492_v15 = vsel %vm1064_vm13, %v1047_v32, %v1081_v38  ;;  %v816_v48 = vmul.f32 %v1842_v51, %v792_v46  ;;  %v2503_v52 = vmul.f32 %v1842_v51, %v793_v49  ;;  %v1218_v40 = vsel %vm578_vm2, %v1196_v30, 0.0 }
 0x1da   : > { %v1121_v27 = vsel %vm578_vm2, %v2492_v15, 0.0  ;;  %v1224_v1 = vsel %vm578_vm2, %v1198_v63, 0.0  ;;  %v1199_v59 = vmul.f32 %v2476_v28, %v2476_v28  ;;  %v1197_v5 = vmul.f32 %v2492_v15, %v2492_v15 }
 0x1db   : > { %1125 = vadd.xlane.f32.xlu1 %v1124_v29  ;;  %v951_v43 = vrot.slane %v815_v41, 2  ;;  %v838_v46 = vrot.slane %v815_v41, 6  ;;  %v952_v8 = vrot.slane %v816_v48, 2  ;;  %v919_v4 = vmul.f32 %v2248_v6, %v815_v41 }
 0x1dc   : > { %1122 = vadd.xlane.f32.xlu0 %v1121_v27  ;;  %v839_v49 = vrot.slane %v816_v48, 6  ;;  %v920_v60 = vmul.f32 %v2248_v6, %v816_v48  ;;  %v953_v20 = vrot.slane %v2503_v52, 2  ;;  %v891_v58 = vsel %vm863_vm9, %v871_v34, %v2351_v16 }
 0x1dd   : > { %v967_v21 = vsel %vm959_vm5, %v950_v18, %v951_v43  ;;  %v854_v22 = vsel %vm846_vm4, %v837_v2, %v838_v46  ;;  %v966_v55 = vsel %vm959_vm5, %v951_v43, %v952_v8  ;;  %v927_v10 = vadd.f32 %v2386_v3, %v891_v58 }
 0x1de   : > { %v991_v12 = vmul.f32 %v2294_v62, %v967_v21  ;;  %v879_v31 = vmul.f32 %v2256_v17, %v854_v22  ;;  %v992_v32 = vmul.f32 %v2294_v62, %v966_v55  ;;  %v853_v53 = vsel %vm846_vm4, %v838_v46, %v839_v49 }
 0x1df   : > { %1219 = vadd.xlane.f32.xlu1 %v1218_v40  ;;  %v880_v18 = vmul.f32 %v2256_v17, %v853_v53  ;;  %v965_v2 = vsel %vm959_vm5, %v952_v8, %v953_v20  ;;  %v818_v30 = vmul.f32 %v1842_v51, %v794_v23  ;;  %v840_v29 = vrot.slane %v2503_v52, 6 }
 0x1e0   : > { %1225 = vadd.xlane.f32.xlu0 %v1224_v1  ;;  %v1011_v33 = vsel %vm979_vm8, %v991_v12, %v2342_v9  ;;  %v899_v56 = vsel %vm863_vm9, %v879_v31, %v2351_v16  ;;  %v993_v38 = vmul.f32 %v2294_v62, %v965_v2  ;;  %v1020_v41 = vadd.f32 %v2398_v44, %v927_v10 }
 0x1e1   : > { %v1027_v63 = vadd.f32 %v1011_v33, %v934_v39  ;;  %v935_v34 = vadd.f32 %v919_v4, %v899_v56  ;;  %v936_v3 = vadd.f32 %v920_v60, %v880_v18  ;;  %v1221_v13 = vsel %vm578_vm2, %v1197_v5, 0.0 }
 0x1e2   : > { %v1227_v25 = vsel %vm578_vm2, %v1199_v59, 0.0  ;;  %v852_v23 = vsel %vm846_vm4, %v839_v49, %v840_v29  ;;  %v954_v51 = vrot.slane %v818_v30, 2  ;;  %v1043_v1 = vadd.f32 %v2315_v36, %v1020_v41 }
 0x1e3   : > { %1222 = vadd.xlane.f32.xlu1 %v1221_v13  ;;  %v1050_v48 = vadd.f32 %v2315_v36, %v1027_v63  ;;  %v1028_v27 = vadd.f32 %v992_v32, %v935_v34  ;;  %v1029_v40 = vadd.f32 %v993_v38, %v936_v3  ;;  %v881_v39 = vmul.f32 %v2256_v17, %v852_v23 }
 0x1e4   : > { %1228 = vadd.xlane.f32.xlu0 %v1227_v25  ;;  %v921_v44 = vmul.f32 %v2248_v6, %v2503_v52  ;;  %v964_v59 = vsel %vm959_vm5, %v953_v20, %v954_v51  ;;  %v841_v5 = vrot.slane %v818_v30, 6  ;;  %vm1060_vm15 = vcmp.ge.f32.partialorder %v1043_v1, 0.0 }
 0x1e5   : > { %vm1067_vm14 = vcmp.ge.f32.partialorder %v1050_v48, 0.0  ;;  %v1084_v43 = vmul.f32 %v2318_v37, %v1050_v48  ;;  %v1051_v46 = vadd.f32 %v2315_v36, %v1028_v27  ;;  %v1052_v8 = vadd.f32 %v2315_v36, %v1029_v40 }
 0x1e6   : > { %v1077_v4 = vmul.f32 %v2318_v37, %v1043_v1  ;;  %v937_v49 = vadd.f32 %v921_v44, %v881_v39  ;;  %v994_v60 = vmul.f32 %v2294_v62, %v964_v59  ;;  %v851_v53 = vsel %vm846_vm4, %v840_v29, %v841_v5 }
 0x1e7   : > { %v2564_v21 = vsel %vm1067_vm14, %v1050_v48, %v1084_v43  ;;  %vm1068_vm1 = vcmp.ge.f32.partialorder %v1051_v46, 0.0  ;;  %v1085_v52 = vmul.f32 %v2318_v37, %v1051_v46  ;;  %vm1069_vm3 = vcmp.ge.f32.partialorder %v1052_v8, 0.0 }
 0x1e8   : > { %v1130_v20 = vsel %vm578_vm2, %v2564_v21, 0.0  ;;  %v1086_v22 = vmul.f32 %v2318_v37, %v1052_v8  ;;  %v2570_v55 = vsel %vm1060_vm15, %v1043_v1, %v1077_v4  ;;  %v1200_v58 = vmul.f32 %v2564_v21, %v2564_v21 }
 0x1e9   : > { %1131 = vadd.xlane.f32.xlu1 %v1130_v20  ;;  %v2574_v12 = vsel %vm1068_vm1, %v1051_v46, %v1085_v52  ;;  %v1030_v31 = vadd.f32 %v994_v60, %v937_v49  ;;  %v1193_v32 = vmul.f32 %v2570_v55, %v2570_v55  ;;  %v922_v10 = vmul.f32 %v2248_v6, %v818_v30 }
 0x1ea   : > { %v1133_v18 = vsel %vm578_vm2, %v2574_v12, 0.0  ;;  %v2582_v2 = vsel %vm1069_vm3, %v1052_v8, %v1086_v22  ;;  %v923_v33 = vmul.f32 %v2248_v6, %v2409_v54  ;;  %v1109_v56 = vsel %vm578_vm2, %v2570_v55, 0.0 }
 0x1eb   : > { %1134 = vadd.xlane.f32.xlu0 %v1133_v18  ;;  %v1230_v38 = vsel %vm578_vm2, %v1200_v58, 0.0  ;;  %v1053_v63 = vadd.f32 %v2315_v36, %v1030_v31  ;;  %v1201_v29 = vmul.f32 %v2574_v12, %v2574_v12  ;;  %v1136_v34 = vsel %vm578_vm2, %v2582_v2, 0.0 }
 0x1ec   : > { %v882_v3 = vmul.f32 %v2256_v17, %v851_v53  ;;  %v963_v30 = vsel %vm959_vm5, %v954_v51, %v955_v14  ;;  %v850_v41 = vsel %vm846_vm4, %v841_v5, %v842_v19  ;;  %v1209_v25 = vsel %vm578_vm2, %v1193_v32, 0.0 }
 0x1ed   : > { %1137 = vadd.xlane.f32.xlu1 %v1136_v34  ;;  %vm1070_vm6 = vcmp.ge.f32.partialorder %v1053_v63, 0.0  ;;  %v1087_v13 = vmul.f32 %v2318_v37, %v1053_v63  ;;  %v995_v23 = vmul.f32 %v2294_v62, %v963_v30  ;;  %v883_v27 = vmul.f32 %v2256_v17, %v850_v41 }
 0x1ee   : > { %v938_v48 = vadd.f32 %v922_v10, %v882_v3  ;;  %v956_v40 = vrot.slane %v2411_v24, 2  ;;  %v843_v51 = vrot.slane %v2411_v24, 6  ;;  %v1202_v39 = vmul.f32 %v2582_v2, %v2582_v2 }
 0x1ef   : > { %1110 = vadd.xlane.f32.xlu0 %v1109_v56  ;;  %v2610_v1 = vsel %vm1070_vm6, %v1053_v63, %v1087_v13  ;;  %v1015_v44 = vsel %vm979_vm8, %v995_v23, %v2342_v9  ;;  %v844_v59 = vrot.slane %v2413_v57, 6  ;;  %v1233_v5 = vsel %vm578_vm2, %v1201_v29, 0.0 }
 0x1f0   : > { %v1031_v43 = vadd.f32 %v1015_v44, %v938_v48  ;;  %v903_v46 = vsel %vm863_vm9, %v883_v27, %v2351_v16  ;;  %v925_v8 = vmul.f32 %v2248_v6, %v2413_v57  ;;  %v962_v49 = vsel %vm959_vm5, %v955_v14, %v956_v40 }
 0x1f1   : > { %1231 = vadd.xlane.f32.xlu1 %v1230_v38  ;;  %v939_v4 = vadd.f32 %v923_v33, %v903_v46  ;;  %v848_v60 = vsel %vm846_vm4, %v843_v51, %v844_v59  ;;  %v957_v52 = vrot.slane %v2413_v57, 2  ;;  %v1139_v20 = vsel %vm578_vm2, %v2610_v1, 0.0 }
 0x1f2   : > { %v1054_v16 = vadd.f32 %v2315_v36, %v1031_v43  ;;  %v996_v22 = vmul.f32 %v2294_v62, %v962_v49  ;;  %v885_v58 = vmul.f32 %v2256_v17, %v848_v60  ;;  %v1236_v31 = vsel %vm578_vm2, %v1202_v39, 0.0 }
 0x1f3   : > { %1140 = vadd.xlane.f32.xlu0 %v1139_v20  ;;  %v958_v32 = vrot.slane %v2405_v47, 2  ;;  %v849_v14 = vsel %vm846_vm4, %v842_v19, %v843_v51  ;;  %v961_v57 = vsel %vm959_vm5, %v956_v40, %v957_v52  ;;  %v924_v54 = vmul.f32 %v2248_v6, %v2411_v24 }
 0x1f4   : > { %vm1071_vm7 = vcmp.ge.f32.partialorder %v1054_v16, 0.0  ;;  %v1088_v53 = vmul.f32 %v2318_v37, %v1054_v16  ;;  %v1032_v18 = vadd.f32 %v996_v22, %v939_v4  ;;  %v941_v10 = vadd.f32 %v925_v8, %v885_v58 }
 0x1f5   : > { %1210 = vadd.xlane.f32.xlu1 %v1209_v25  ;;  %v960_v33 = vsel %vm959_vm5, %v957_v52, %v958_v32  ;;  %v884_v56 = vmul.f32 %v2256_v17, %v849_v14  ;;  %v847_v19 = vsel %vm846_vm4, %v844_v59, %v845_v50  ;;  %v1203_v38 = vmul.f32 %v2610_v1, %v2610_v1  ;;  %v1851_v14 = vld [vmem:[%s2049_s13 + $0x8] sm:$0xff] }
 0x1f6   : > { %v1055_v63 = vadd.f32 %v2315_v36, %v1032_v18  ;;  %v998_v29 = vmul.f32 %v2294_v62, %v960_v33  ;;  %v886_v34 = vmul.f32 %v2256_v17, %v847_v19  ;;  %v2659_v3 = vsel %vm1071_vm7, %v1054_v16, %v1088_v53  ;;  %v1853_v53 = vld [vmem:[%s2049_s13 + $0x10] sm:$0xff]  ;;  %v1854_v18 = vld [vmem:[%s2049_s13 + $0x20] sm:$0xff] }
 0x1f7   : > { %1237 = vadd.xlane.f32.xlu0 %v1236_v31  ;;  %v940_v30 = vadd.f32 %v924_v54, %v884_v56  ;;  %v997_v24 = vmul.f32 %v2294_v62, %v961_v57  ;;  %v926_v41 = vmul.f32 %v2248_v6, %v2405_v47  ;;  %v975_v25 = vsel %vm959_vm5, %v958_v32, %v943_v11  ;;  %v1833_v31 = vld [vmem:[%s2932_s8 + $0x8] sm:$0xff]   ;;  %v1834_v32 = vld [vmem:[%s2932_s8] sm:$0xff]   ;;  %v1856_v33 = vld [vmem:[%s2049_s13 + $0x30] sm:$0xff] }
 0x1f8   : > { %vm1072_vm9 = vcmp.ge.f32.partialorder %v1055_v63, 0.0  ;;  %v1089_v50 = vmul.f32 %v2318_v37, %v1055_v63  ;;  %v1034_v13 = vadd.f32 %v998_v29, %v941_v10  ;;  %v999_v48 = vmul.f32 %v2294_v62, %v975_v25  ;;  %1770 = vmatprep.subr.bf16.mxu1 %v1833_v31  ;;  %v1852_v57 = vld [vmem:[%s2049_s13] sm:$0xff]  ;;  %v1855_v10 = vld [vmem:[%s2049_s13 + $0x18] sm:$0xff]  ;;  %v1857_v54 = vld [vmem:[%s2049_s13 + $0x28] sm:$0xff] }
 0x1f9   : > { %1234 = vadd.xlane.f32.xlu1 %v1233_v5  ;;  %v1033_v17 = vadd.f32 %v997_v24, %v940_v30  ;;  %v942_v23 = vadd.f32 %v926_v41, %v886_v34  ;;  %v1239_v27 = vsel %vm578_vm2, %v1203_v38, 0.0  ;;  %v1142_v6 = vsel %vm578_vm2, %v2659_v3, 0.0  ;;  %1771 = vmatpush3.bf16.msra.mxu1 %v1833_v31  ;;  %v1858_v19 = vld [vmem:[%s2049_s13 + $0x40] sm:$0xff]  ;;  %v1859_v38 = vld [vmem:[%s2049_s13 + $0x38] sm:$0xff]  ;;  %v1861_v34 = vld [vmem:[%s2049_s13 + $0x48] sm:$0xff] }
 0x1fa   : > { %v1057_v40 = vadd.f32 %v2315_v36, %v1034_v13  ;;  %v2674_v47 = vsel %vm1072_vm9, %v1055_v63, %v1089_v50  ;;  %v1019_v45 = vsel %vm979_vm8, %v999_v48, %v2342_v9  ;;  %v1204_v11 = vmul.f32 %v2659_v3, %v2659_v3  ;;  %1772 = vmatprep.subr.bf16.mxu1 %v1834_v32  ;;  %v1860_v63 = vld [vmem:[%s2049_s13 + $0x50] sm:$0xff]  ;;  %v1862_v30 = vld [vmem:[%s2049_s13 + $0x60] sm:$0xff]  ;;  %v1863_v50 = vld [vmem:[%s2049_s13 + $0x58] sm:$0xff] }
 0x1fb   : > { %1240 = vadd.xlane.f32.xlu0 %v1239_v27  ;;  %v1056_v42 = vadd.f32 %v2315_v36, %v1033_v17  ;;  %v1035_v51 = vadd.f32 %v1019_v45, %v942_v23  ;;  %v1145_v44 = vsel %vm578_vm2, %v2674_v47, 0.0  ;;  %v1205_v52 = vmul.f32 %v2674_v47, %v2674_v47  ;;  %v1864_v13 = vld [vmem:[%s2049_s13 + $0x70] sm:$0xff]  ;;  %v1865_v23 = vld [vmem:[%s2049_s13 + $0x68] sm:$0xff] }
 0x1fc   : > { %vm1074_vm4 = vcmp.ge.f32.partialorder %v1057_v40, 0.0  ;;  %v1091_v62 = vmul.f32 %v2318_v37, %v1057_v40  ;;  %v1242_v9 = vsel %vm578_vm2, %v1204_v11, 0.0 }
 0x1fd   : > { %1143 = vadd.xlane.f32.xlu1 %v1142_v6  ;;  %vm1073_vm5 = vcmp.ge.f32.partialorder %v1056_v42, 0.0  ;;  %v1090_v39 = vmul.f32 %v2318_v37, %v1056_v42  ;;  %v1058_v59 = vadd.f32 %v2315_v36, %v1035_v51  ;;  %v1245_v16 = vsel %vm578_vm2, %v1205_v52, 0.0  ;;  %1773 = vmatpush3.bf16.msra.mxu1 %v1834_v32 }
 0x1fe   : > { %v2687_v5 = vsel %vm1074_vm4, %v1057_v40, %v1091_v62  ;;  %v1866_v40 = vld [vmem:[%s2049_s13 + $0x78] sm:$0xff]  ;;  %s355_s13 = sand.u32 1, %s1919_s18  }
 0x1ff   : > { %1146 = vadd.xlane.f32.xlu0 %v1145_v44  ;;  %v2689_v7 = vsel %vm1073_vm5, %v1056_v42, %v1090_v39  ;;  %v1092_v43 = vmul.f32 %v2318_v37, %v1058_v59  ;;  %v1151_v46 = vsel %vm578_vm2, %v2687_v5, 0.0  ;;  %vm1075_vm8 = vcmp.ge.f32.partialorder %v1058_v59, 0.0  ;;  %s1698_s23 = sshll.u32 %s355_s13, 7  ;;  %s2884_s3 = scalar_lea.sflag [#allocation5], %s355_s13 }
 0x200   : > { %v1206_v8 = vmul.f32 %v2689_v7, %v2689_v7  ;;  %v1148_v36 = vsel %vm578_vm2, %v2689_v7, 0.0  ;;  %v1207_v60 = vmul.f32 %v2687_v5, %v2687_v5  ;;  %s2812_s27 = scalar_lea.vmem [#allocation4], %s1698_s23 }
 0x201   : > { %1243 = vadd.xlane.f32.xlu1 %v1242_v9  ;;  %v2699_v4 = vsel %vm1075_vm8, %v1058_v59, %v1092_v43  ;;  %s1632_s29 = sshll.u32 %s2812_s27, 4  ;;  %s2876_s29 = int_to_ptr.vmem [resolvable:$true] %s1632_s29 }
 0x202   : > { %v1248_v49 = vsel %vm578_vm2, %v1206_v8, 0.0  ;;  %v1154_v37 = vsel %vm578_vm2, %v2699_v4, 0.0  ;;  %v1251_v20 = vsel %vm578_vm2, %v1207_v60, 0.0  ;;  %v1208_v22 = vmul.f32 %v2699_v4, %v2699_v4  ;;  %s1867_s14 = scalar_lea.vmem %s2876_s29, 2048 }
 0x203   : > { %1152 = vadd.xlane.f32.xlu0 %v1151_v46  ;;  %p1868_p11 = scmp.ne.s32.totalorder %s2876_s29, %s1867_s14 }
 0x204   : > { %v1254_v58 = vsel %vm578_vm2, %v1208_v22, 0.0 }
 0x205   : > { %1149 = vadd.xlane.f32.xlu1 %v1148_v36  ;;  %p1869_p12 = pnand %p1868_p11, %p2032_p5 }
 0x207   : > { %1249 = vadd.xlane.f32.xlu0 %v1248_v49  ;;  %p1870_p13 = pneg %p1869_p12 }
 0x209   : > { %1155 = vadd.xlane.f32.xlu1 %v1154_v37 }
 0x20b   : > { %1252 = vadd.xlane.f32.xlu0 %v1251_v20 }
 0x20d   : > { %1246 = vadd.xlane.f32.xlu1 %v1245_v16 }
 0x211   : > { %1255 = vadd.xlane.f32.xlu1 %v1254_v58 }
 0x221   : > { %1521 = vrot.lane.b32.xlu0 %v1852_v57, %s1929_s16 }
 0x222   : > { %1523 = vrot.lane.b32.xlu1 %v1851_v14, %s1929_s16 }
 0x225   : > { %1529 = vrot.lane.b32.xlu0 %v1854_v18, %s1929_s16 }
 0x226   : > { %1525 = vrot.lane.b32.xlu1 %v1853_v53, %s1929_s16 }
 0x229   : > { %1533 = vrot.lane.b32.xlu0 %v1856_v33, %s1929_s16 }
 0x22a   : > { %1527 = vrot.lane.b32.xlu1 %v1855_v10, %s1929_s16 }
 0x22d   : > { %1537 = vrot.lane.b32.xlu0 %v1858_v19, %s1929_s16 }
 0x22e   : > { %1531 = vrot.lane.b32.xlu1 %v1857_v54, %s1929_s16 }
 0x231   : > { %1541 = vrot.lane.b32.xlu0 %v1860_v63, %s1929_s16 }
 0x232   : > { %1535 = vrot.lane.b32.xlu1 %v1859_v38, %s1929_s16 }
 0x235   : > { %1545 = vrot.lane.b32.xlu0 %v1862_v30, %s1929_s16 }
 0x236   : > { %1539 = vrot.lane.b32.xlu1 %v1861_v34, %s1929_s16 }
 0x239   : > { %1549 = vrot.lane.b32.xlu0 %v1864_v13, %s1929_s16 }
 0x23a   : > { %1543 = vrot.lane.b32.xlu1 %v1863_v50, %s1929_s16 }
 0x23e   : > { %1547 = vrot.lane.b32.xlu1 %v1865_v23, %s1929_s16 }
 0x242   : > { %1551 = vrot.lane.b32.xlu1 %v1866_v40, %s1929_s16  ;;  %s1871_s16 = sshll.u32 %s1930_s15, 4  ;;  %s1872_s16 = int_to_ptr.vmem [resolvable:$false] %s1871_s16 }
 0x243   : > { %s1873_s7 = scalar_lea.vmem %s1872_s16, 4096  ;;  %p1874_p0 = scmp.lt.s32.totalorder %s2876_s29, %s1872_s16 }
 0x244   : > { %p1875_p1 = scmp.lt.s32.totalorder %s1873_s7, %s1867_s14 }
 0x246   : > { %p1876_p2 = por %p1875_p1, %p1874_p0 }
 0x248   : > { %v1117_v56 = vpop.xlane.xlu0 %1116  ;;  %p1877_p3 = pnand %p1876_p2, %p1870_p13 }
 0x24a   : > { %v1114_v24 = vpop.xlane.xlu1 %1113 }
 0x24c   : > { %v1214_v29 = vpop.xlane.xlu0 %1213 }
 0x250   : > { %v1217_v41 = vpop.xlane.xlu0 %1216 }
 0x260   : > { %v1120_v25 = vpop.xlane.xlu1 %1119 }
 0x261   : > { %v1129_v17 = vpop.xlane.xlu0 %1128 }
 0x264   : > { %v1126_v48 = vpop.xlane.xlu1 %1125 }
 0x265   : > { %v1123_v27 = vpop.xlane.xlu0 %1122 }
 0x266   : > { %v1166_v11 = vadd.f32 %v1126_v48, %v1123_v27 }
 0x268   : > { %v1220_v6 = vpop.xlane.xlu1 %1219  ;;  %v1167_v51 = vadd.f32 %v1166_v11, %v1129_v17 }
 0x269   : > { %v1226_v42 = vpop.xlane.xlu0 %1225 }
 0x26c   : > { %v1223_v45 = vpop.xlane.xlu1 %1222 }
 0x26d   : > { %v1229_v62 = vpop.xlane.xlu0 %1228  ;;  %v1266_v9 = vadd.f32 %v1226_v42, %v1223_v45 }
 0x26f   : > { %v1267_v49 = vadd.f32 %v1266_v9, %v1229_v62 }
 0x272   : > { %v1132_v39 = vpop.xlane.xlu1 %1131 }
 0x273   : > { %v1168_v44 = vadd.f32 %v1167_v51, %v1132_v39 }
 0x274   : > { %v1135_v59 = vpop.xlane.xlu0 %1134 }
 0x275   : > { %v1169_v43 = vrot.slane %v1168_v44, 4 }
 0x276   : > { %v1138_v46 = vpop.xlane.xlu1 %1137 }
 0x277   : > { %v1170_v8 = vadd.f32 %v1169_v43, %v1168_v44  ;;  %v1175_v30 = vadd.f32 %v1138_v46, %v1135_v59 }
 0x278   : > { %v1111_v36 = vpop.xlane.xlu0 %1110 }
 0x279   : > { %v1171_v60 = vrot.slane %v1170_v8, 2  ;;  %v1157_v37 = vadd.f32 %v1114_v24, %v1111_v36 }
 0x27a   : > { %v1232_v52 = vpop.xlane.xlu1 %1231 }
 0x27b   : > { %v1172_v20 = vadd.f32 %v1171_v60, %v1170_v8  ;;  %v1158_v16 = vadd.f32 %v1157_v37, %v1117_v56  ;;  %v1268_v22 = vadd.f32 %v1267_v49, %v1232_v52 }
 0x27c   : > { %v1141_v58 = vpop.xlane.xlu0 %1140 }
 0x27d   : > { %v1173_v31 = vrot.slane %v1172_v20, 1  ;;  %v1159_v32 = vadd.f32 %v1158_v16, %v1120_v25  ;;  %v1269_v14 = vrot.slane %v1268_v22, 4  ;;  %v1176_v48 = vadd.f32 %v1175_v30, %v1141_v58 }
 0x27e   : > { %v1211_v57 = vpop.xlane.xlu1 %1210 }
 0x27f   : > { %v1160_v53 = vrot.slane %v1159_v32, 4  ;;  %v1270_v18 = vadd.f32 %v1269_v14, %v1268_v22  ;;  %v1257_v10 = vadd.f32 %v1214_v29, %v1211_v57  ;;  %v1174_v33 = vadd.f32 %v1173_v31, %v1172_v20 }
 0x280   : > { %v1238_v54 = vpop.xlane.xlu0 %1237 }
 0x281   : > { %v1161_v19 = vadd.f32 %v1160_v53, %v1159_v32  ;;  %v1271_v38 = vrot.slane %v1270_v18, 2  ;;  %v1258_v63 = vadd.f32 %v1257_v10, %v1217_v41  ;;  %v2751_v56 = vmul.f32 0.0009765625, %v1174_v33 }
 0x282   : > { %v1235_v34 = vpop.xlane.xlu1 %1234 }
 0x283   : > { %v1162_v24 = vrot.slane %v1161_v19, 2  ;;  %v1272_v50 = vadd.f32 %v1271_v38, %v1270_v18  ;;  %v1259_v13 = vadd.f32 %v1258_v63, %v1220_v6  ;;  %v1275_v40 = vadd.f32 %v1238_v54, %v1235_v34 }
 0x284   : > { %v1241_v17 = vpop.xlane.xlu0 %1240  ;;  %v1302_v41 = vmul.f32 %v2751_v56, %v2751_v56 }
 0x285   : > { %v1163_v23 = vadd.f32 %v1162_v24, %v1161_v19  ;;  %v1273_v25 = vrot.slane %v1272_v50, 1  ;;  %v1260_v27 = vrot.slane %v1259_v13, 4  ;;  %v1276_v9 = vadd.f32 %v1275_v40, %v1241_v17 }
 0x286   : > { %v1144_v42 = vpop.xlane.xlu1 %1143 }
 0x287   : > { %v1164_v29 = vrot.slane %v1163_v23, 1  ;;  %v1274_v45 = vadd.f32 %v1273_v25, %v1272_v50  ;;  %v1261_v11 = vadd.f32 %v1260_v27, %v1259_v13  ;;  %v1177_v62 = vadd.f32 %v1176_v48, %v1144_v42 }
 0x288   : > { %v1147_v51 = vpop.xlane.xlu0 %1146 }
 0x289   : > { %v1165_v39 = vadd.f32 %v1164_v29, %v1163_v23  ;;  %v1298_v44 = vmul.f32 0.0009765625, %v1274_v45  ;;  %v1262_v6 = vrot.slane %v1261_v11, 2  ;;  %v1178_v59 = vrot.slane %v1177_v62, 4 }
 0x28a   : > { %v1244_v43 = vpop.xlane.xlu1 %1243 }
 0x28b   : > { %v1306_v46 = vsub.f32 %v1298_v44, %v1302_v41  ;;  %v1263_v8 = vadd.f32 %v1262_v6, %v1261_v11  ;;  %v1179_v36 = vadd.f32 %v1178_v59, %v1177_v62  ;;  %v1277_v49 = vadd.f32 %v1276_v9, %v1244_v43 }
 0x28c   : > { %v1153_v60 = vpop.xlane.xlu0 %1152  ;;  %v2755_v37 = vmul.f32 0.0009765625, %v1165_v39 }
 0x28d   : > { %v1264_v52 = vrot.slane %v1263_v8, 1  ;;  %v1180_v20 = vrot.slane %v1179_v36, 2  ;;  %v1310_v16 = vmax.f32 %v1306_v46, 0.0  ;;  %v1278_v22 = vrot.slane %v1277_v49, 4 }
 0x28e   : > { %v1150_v58 = vpop.xlane.xlu1 %1149  ;;  %v1301_v18 = vmul.f32 %v2755_v37, %v2755_v37 }
 0x28f   : > { %v1265_v31 = vadd.f32 %v1264_v52, %v1263_v8  ;;  %v1181_v32 = vadd.f32 %v1180_v20, %v1179_v36  ;;  %v1184_v14 = vadd.f32 %v1150_v58, %v1147_v51  ;;  %v1279_v57 = vadd.f32 %v1278_v22, %v1277_v49 }
 0x290   : > { %v1330_v54 = vadd.f32 1e-10, %v1310_v16  ;;  %v1250_v38 = vpop.xlane.xlu0 %1249  ;;  %v1313_v16 = vsub.f32 %v2570_v55, %v2755_v37  ;;  %v1317_v22 = vsub.f32 %v2492_v15, %v2751_v56  ;;  %v1318_v58 = vsub.f32 %v2484_v35, %v2751_v56 }
 0x291   : > { %v1297_v53 = vmul.f32 0.0009765625, %v1265_v31  ;;  %v1182_v10 = vrot.slane %v1181_v32, 1  ;;  %v1185_v33 = vadd.f32 %v1184_v14, %v1153_v60  ;;  %v1280_v19 = vrot.slane %v1279_v57, 2 }
 0x292   : > { %v1156_v63 = vpop.xlane.xlu1 %1155  ;;  %1843 = vrsqrt.f32 %v1330_v54  ;;  %v1314_v14 = vsub.f32 %v2347_v61, %v2755_v37 }
 0x293   : > { %v1305_v34 = vsub.f32 %v1297_v53, %v1301_v18  ;;  %v1183_v30 = vadd.f32 %v1182_v10, %v1181_v32  ;;  %v1186_v24 = vadd.f32 %v1185_v33, %v1156_v63  ;;  %v1281_v50 = vadd.f32 %v1280_v19, %v1279_v57 }
 0x294   : > { %v1253_v45 = vpop.xlane.xlu0 %1252  ;;  %v1315_v57 = vsub.f32 %v2334_v0, %v2755_v37  ;;  %v1316_v18 = vsub.f32 %v2470_v26, %v2755_v37  ;;  %v1319_v0 = vsub.f32 %v2476_v28, %v2751_v56  ;;  %v1320_v26 = vsub.f32 %v2564_v21, %v2751_v56 }
 0x295   : > { %v1309_v13 = vmax.f32 %v1305_v34, 0.0  ;;  %v1187_v17 = vrot.slane %v1186_v24, 4  ;;  %v2759_v23 = vmul.f32 0.0009765625, %v1183_v30  ;;  %v1282_v25 = vrot.slane %v1281_v50, 1 }
 0x296   : > { %v1247_v48 = vpop.xlane.xlu1 %1246 }
 0x297   : > { %v1329_v27 = vadd.f32 1e-10, %v1309_v13  ;;  %v1188_v40 = vadd.f32 %v1187_v17, %v1186_v24  ;;  %v1284_v42 = vadd.f32 %v1250_v38, %v1247_v48  ;;  %v1283_v29 = vadd.f32 %v1282_v25, %v1281_v50 }
 0x298   : > { %v1303_v51 = vmul.f32 %v2759_v23, %v2759_v23  ;;  %v1321_v17 = vsub.f32 %v2574_v12, %v2759_v23  ;;  %v1322_v25 = vsub.f32 %v2582_v2, %v2759_v23  ;;  %v1323_v21 = vsub.f32 %v2610_v1, %v2759_v23 }
 0x299   : > { %1845 = vrsqrt.f32 %v1329_v27  ;;  %v1189_v11 = vrot.slane %v1188_v40, 2  ;;  %v1285_v62 = vadd.f32 %v1284_v42, %v1253_v45  ;;  %v1299_v41 = vmul.f32 0.0009765625, %v1283_v29 }
 0x29a   : > { %v1256_v39 = vpop.xlane.xlu1 %1255  ;;  %v1324_v56 = vsub.f32 %v2659_v3, %v2759_v23 }
 0x29b   : > { %v1190_v44 = vadd.f32 %v1189_v11, %v1188_v40  ;;  %v1286_v6 = vadd.f32 %v1285_v62, %v1256_v39  ;;  %v1307_v59 = vsub.f32 %v1299_v41, %v1303_v51 }
 0x29d   : > { %v1191_v9 = vrot.slane %v1190_v44, 1  ;;  %v1287_v43 = vrot.slane %v1286_v6, 4  ;;  %v1311_v46 = vmax.f32 %v1307_v59, 0.0 }
 0x29f   : > { %v1288_v8 = vadd.f32 %v1287_v43, %v1286_v6  ;;  %v1331_v36 = vadd.f32 1e-10, %v1311_v46  ;;  %v1192_v49 = vadd.f32 %v1191_v9, %v1190_v44  ;;  %v1844_v52 = vpop.eup %1843 }
 0x2a0   : > { %v1341_v10 = vmul.f32 %v1844_v52, %v1317_v22  ;;  %v1342_v55 = vmul.f32 %v1844_v52, %v1318_v58  ;;  %v1343_v50 = vmul.f32 %v1844_v52, %v1319_v0  ;;  %v1344_v13 = vmul.f32 %v1844_v52, %v1320_v26 }
 0x2a1   : > { %v1289_v60 = vrot.slane %v1288_v8, 2  ;;  %1847 = vrsqrt.f32 %v1331_v36  ;;  %v1296_v31 = vmul.f32 0.0009765625, %v1192_v49 }
 0x2a2   : > { %v1355_v61 = vpack.c.bf16 %v1342_v55, %v1341_v10  ;;  %v1356_v28 = vpack.c.bf16 %v1344_v13, %v1343_v50 }
 0x2a3   : > { %v1290_v20 = vadd.f32 %v1289_v60, %v1288_v8  ;;  %v1304_v63 = vmul.f32 %v1296_v31, %v1296_v31  ;;  %v1325_v11 = vsub.f32 %v2674_v47, %v1296_v31  ;;  %v1326_v62 = vsub.f32 %v2689_v7, %v1296_v31  ;;  %v1524_v47 = vpop.permute.xlu1 %1523  ;;  %v1522_v7 = vpop.permute.xlu0 %1521  ;;  %v2803_v8 = vld [vmem:[%s2933_s9] ss:$0 sm:$0xff] }
 0x2a4   : > { %v1327_v41 = vsub.f32 %v2687_v5, %v1296_v31  ;;  %v1328_v51 = vsub.f32 %v2699_v4, %v1296_v31 }
 0x2a5   : > { %v1291_v32 = vrot.slane %v1290_v20, 1 }
 0x2a6   : > { %v1846_v53 = vpop.eup %1845 }
 0x2a7   : > { %v1292_v33 = vadd.f32 %v1291_v32, %v1290_v20  ;;  %v1337_v54 = vmul.f32 %v1846_v53, %v1313_v16  ;;  %v1338_v15 = vmul.f32 %v1846_v53, %v1314_v14  ;;  %v1339_v19 = vmul.f32 %v1846_v53, %v1315_v57  ;;  %v1526_v9 = vpop.permute.xlu1 %1525  ;;  %v1530_v5 = vpop.permute.xlu0 %1529 }
 0x2a8   : > { %v1340_v38 = vmul.f32 %v1846_v53, %v1316_v18  ;;  %v1571_v49 = vsel %vm406_vm0, 0.0, %v1526_v9  ;;  %v1569_v20 = vsel %vm406_vm0, 0.0, %v1522_v7 }
 0x2a9   : > { %v1300_v35 = vmul.f32 0.0009765625, %v1292_v33  ;;  %v1353_v34 = vpack.c.bf16 %v1338_v15, %v1337_v54  ;;  %v1570_v54 = vsel %vm406_vm0, 0.0, %v1524_v47 }
 0x2aa   : > { %v1354_v30 = vpack.c.bf16 %v1340_v38, %v1339_v19 }
 0x2ab   : > { %v1308_v24 = vsub.f32 %v1300_v35, %v1304_v63  ;;  %1774 = vmatprep.mubr.msk.bf16.mxu1 %vm578_vm2, %v1353_v34  ;;  %v1528_v43 = vpop.permute.xlu1 %1527  ;;  %v1534_v4 = vpop.permute.xlu0 %1533  ;;  %v1573_v34 = vsel %vm406_vm0, 0.0, %v1530_v5 }
 0x2ac   : > { %1775 = vmatmul.mubr.msk.bf16.vlgmr.msra.gmra.mxu1 %vm578_vm2, %v1354_v30  ;;  %v1572_v14 = vsel %vm406_vm0, 0.0, %v1528_v43  ;;  %v1575_v19 = vsel %vm406_vm0, 0.0, %v1534_v4 }
 0x2ad   : > { %v1312_v37 = vmax.f32 %v1308_v24, 0.0  ;;  %1778 = vmatprep.mubr.msk.bf16.mxu1 %vm578_vm2, %v1355_v61 }
 0x2ae   : > { %v1848_v48 = vpop.eup %1847 }
 0x2af   : > { %v1332_v27 = vadd.f32 1e-10, %v1312_v37  ;;  %v1345_v40 = vmul.f32 %v1848_v48, %v1321_v17  ;;  %v1346_v42 = vmul.f32 %v1848_v48, %v1322_v25  ;;  %v1347_v12 = vmul.f32 %v1848_v48, %v1323_v21  ;;  %v1532_v46 = vpop.permute.xlu1 %1531  ;;  %v1538_v31 = vpop.permute.xlu0 %1537 }
 0x2b0   : > { %v1348_v45 = vmul.f32 %v1848_v48, %v1324_v56  ;;  %v1577_v56 = vsel %vm406_vm0, 0.0, %v1538_v31 }
 0x2b1   : > { %1849 = vrsqrt.f32 %v1332_v27  ;;  %v1357_v29 = vpack.c.bf16 %v1346_v42, %v1345_v40  ;;  %v1574_v40 = vsel %vm406_vm0, 0.0, %v1532_v46 }
 0x2b2   : > { %v1358_v2 = vpack.c.bf16 %v1348_v45, %v1347_v12 }
 0x2b3   : > { %v1536_v52 = vpop.permute.xlu1 %1535  ;;  %v1542_v63 = vpop.permute.xlu0 %1541 }
 0x2b4   : > { %1779 = vmatmul.mubr.msk.bf16.gmra.mxu1 %vm578_vm2, %v1356_v28  ;;  %v1576_v26 = vsel %vm406_vm0, 0.0, %v1536_v52  ;;  %v1579_v28 = vsel %vm406_vm0, 0.0, %v1542_v63 }
 0x2b5   : > { %1782 = vmatprep.mubr.msk.bf16.mxu1 %vm578_vm2, %v1357_v29 }
 0x2b7   : > { %v1540_v33 = vpop.permute.xlu1 %1539  ;;  %v1546_v27 = vpop.permute.xlu0 %1545 }
 0x2b8   : > { %v1581_v5 = vsel %vm406_vm0, 0.0, %v1546_v27 }
 0x2bb   : > { %v1544_v13 = vpop.permute.xlu1 %1543 }
 0x2bc   : > { %1783 = vmatmul.mubr.msk.bf16.gmra.mxu1 %vm578_vm2, %v1358_v2 }
 0x2be   : > { %v1850_v1 = vpop.eup %1849 }
 0x2bf   : > { %v1349_v39 = vmul.f32 %v1850_v1, %v1325_v11  ;;  %v1350_v44 = vmul.f32 %v1850_v1, %v1326_v62  ;;  %v1351_v3 = vmul.f32 %v1850_v1, %v1327_v41  ;;  %v1352_v23 = vmul.f32 %v1850_v1, %v1328_v51  ;;  %v1548_v11 = vpop.permute.xlu1 %1547 }
 0x2c0   : > { %v1580_v41 = vsel %vm406_vm0, 0.0, %v1544_v13  ;;  %v1582_v31 = vsel %vm406_vm0, 0.0, %v1548_v11 }
 0x2c1   : > { %v1359_v6 = vpack.c.bf16 %v1350_v44, %v1349_v39  ;;  %v1360_v59 = vpack.c.bf16 %v1352_v23, %v1351_v3  ;;  %v1550_v39 = vpop.permute.xlu0 %1549 }
 0x2c2   : > { %v1583_v47 = vsel %vm406_vm0, 0.0, %v1550_v39 }
 0x2c3   : > { %1786 = vmatprep.mubr.msk.bf16.mxu1 %vm578_vm2, %v1359_v6  ;;  %v1578_v6 = vsel %vm406_vm0, 0.0, %v1540_v33  ;;  %v1552_v43 = vpop.permute.xlu1 %1551 }
 0x2c4   : > { %1787 = vmatmul.mubr.msk.bf16.gmra.mxu1 %vm578_vm2, %v1360_v59 }
 0x36c   : > { %v1776_v36 = vpop.f32.mrf.mxu1 }
 0x36d   : > { %v1451_v60 = vadd.f32 %v1776_v36, %v2803_v8 }
 0x36e   : > { %v1442_v16 = vpop.f32.mrf.mxu1 }
 0x36f   : > { %v1587_v22 = vadd.f32 %v1571_v49, %v1451_v60  ;;  %v1443_v58 = vadd.f32 %v2803_v8, %v1442_v16  ;;  %v1584_v60 = vsel %vm406_vm0, 0.0, %v1552_v43 }
 0x370   : > { %v1777_v32 = vpop.f32.mrf.mxu1 }
 0x371   : > { %1603 = vst.msk [vmem:[%s2812_s27 + $0x10] sm:$0xff] %vm578_vm2, %v1587_v22  ;;  %v1585_v57 = vadd.f32 %v1569_v20, %v1443_v58  ;;  %v1454_v53 = vadd.f32 %v1777_v32, %v2803_v8 }
 0x372   : > { %v1445_v18 = vpop.f32.mrf.mxu1 }
 0x373   : > { %1601 = vst.msk [vmem:[%s2812_s27] sm:$0xff] %vm578_vm2, %v1585_v57  ;;  %v1588_v10 = vadd.f32 %v1572_v14, %v1454_v53  ;;  %v1446_v55 = vadd.f32 %v2803_v8, %v1445_v18 }
 0x374   : > { %v1780_v15 = vpop.f32.mrf.mxu1 }
 0x375   : > { %1604 = vst.msk [vmem:[%s2812_s27 + $0x18] sm:$0xff] %vm578_vm2, %v1588_v10  ;;  %v1586_v38 = vadd.f32 %v1570_v54, %v1446_v55  ;;  %v1467_v35 = vadd.f32 %v1780_v15, %v2803_v8 }
 0x376   : > { %v1458_v30 = vpop.f32.mrf.mxu1 }
 0x377   : > { %1602 = vst.msk [vmem:[%s2812_s27 + $0x8] sm:$0xff] %vm578_vm2, %v1586_v38  ;;  %v1591_v24 = vadd.f32 %v1575_v19, %v1467_v35  ;;  %v1459_v61 = vadd.f32 %v2803_v8, %v1458_v30 }
 0x378   : > { %v1781_v0 = vpop.f32.mrf.mxu1 }
 0x379   : > { %1607 = vst.msk [vmem:[%s2812_s27 + $0x30] sm:$0xff] %vm578_vm2, %v1591_v24  ;;  %v1589_v37 = vadd.f32 %v1573_v34, %v1459_v61  ;;  %v1470_v50 = vadd.f32 %v1781_v0, %v2803_v8 }
 0x37a   : > { %v1461_v17 = vpop.f32.mrf.mxu1 }
 0x37b   : > { %1605 = vst.msk [vmem:[%s2812_s27 + $0x20] sm:$0xff] %vm578_vm2, %v1589_v37  ;;  %v1592_v25 = vadd.f32 %v1576_v26, %v1470_v50  ;;  %v1462_v48 = vadd.f32 %v2803_v8, %v1461_v17 }
 0x37c   : > { %v1784_v42 = vpop.f32.mrf.mxu1 }
 0x37d   : > { %1608 = vst.msk [vmem:[%s2812_s27 + $0x38] sm:$0xff] %vm578_vm2, %v1592_v25  ;;  %v1590_v29 = vadd.f32 %v1574_v40, %v1462_v48  ;;  %v1483_v21 = vadd.f32 %v1784_v42, %v2803_v8 }
 0x37e   : > { %v1474_v12 = vpop.f32.mrf.mxu1 }
 0x37f   : > { %1606 = vst.msk [vmem:[%s2812_s27 + $0x28] sm:$0xff] %vm578_vm2, %v1590_v29  ;;  %v1595_v45 = vadd.f32 %v1579_v28, %v1483_v21  ;;  %v1475_v2 = vadd.f32 %v2803_v8, %v1474_v12 }
 0x380   : > { %v1785_v62 = vpop.f32.mrf.mxu1 }
 0x381   : > { %1611 = vst.msk [vmem:[%s2812_s27 + $0x50] sm:$0xff] %vm578_vm2, %v1595_v45  ;;  %v1593_v51 = vadd.f32 %v1577_v56, %v1475_v2  ;;  %v1486_v1 = vadd.f32 %v1785_v62, %v2803_v8 }
 0x382   : > { %v1477_v44 = vpop.f32.mrf.mxu1 }
 0x383   : > { %1609 = vst.msk [vmem:[%s2812_s27 + $0x40] sm:$0xff] %vm578_vm2, %v1593_v51  ;;  %v1596_v3 = vadd.f32 %v1580_v41, %v1486_v1  ;;  %v1478_v23 = vadd.f32 %v2803_v8, %v1477_v44 }
 0x384   : > { %v1788_v59 = vpop.f32.mrf.mxu1 }
 0x385   : > { %1612 = vst.msk [vmem:[%s2812_s27 + $0x58] sm:$0xff] %vm578_vm2, %v1596_v3  ;;  %v1594_v9 = vadd.f32 %v1578_v6, %v1478_v23  ;;  %v1499_v7 = vadd.f32 %v1788_v59, %v2803_v8 }
 0x386   : > { %v1490_v46 = vpop.f32.mrf.mxu1 }
 0x387   : > { %1610 = vst.msk [vmem:[%s2812_s27 + $0x48] sm:$0xff] %vm578_vm2, %v1594_v9  ;;  %v1599_v4 = vadd.f32 %v1583_v47, %v1499_v7  ;;  %v1491_v36 = vadd.f32 %v2803_v8, %v1490_v46 }
 0x388   : > { %v1789_v49 = vpop.f32.mrf.mxu1 }
 0x389   : > { %1615 = vst.msk [vmem:[%s2812_s27 + $0x70] sm:$0xff] %vm578_vm2, %v1599_v4  ;;  %v1597_v52 = vadd.f32 %v1581_v5, %v1491_v36  ;;  %v1502_v20 = vadd.f32 %v1789_v49, %v2803_v8 }
 0x38a   : > { %v1493_v16 = vpop.f32.mrf.mxu1 }
 0x38b   : > { %1613 = vst.msk [vmem:[%s2812_s27 + $0x60] sm:$0xff] %vm578_vm2, %v1597_v52  ;;  %v1600_v22 = vadd.f32 %v1584_v60, %v1502_v20  ;;  %v1494_v58 = vadd.f32 %v2803_v8, %v1493_v16 }
 0x38d   : > { %1616 = vst.msk [vmem:[%s2812_s27 + $0x78] sm:$0xff] %vm578_vm2, %v1600_v22  ;;  %v1598_v32 = vadd.f32 %v1582_v31, %v1494_v58 }
 0x38f   : > { %1614 = vst.msk [vmem:[%s2812_s27 + $0x68] sm:$0xff] %vm578_vm2, %v1598_v32 }
 0x390   : > { %1880 = shalt.err (!%p1877_p3)
}
 0x391   : > { %s1881_s13 = scalar_lea.hbm %s2874_s12, 2048  ;;  %s1885_s27 = scalar_lea.hbm %s2934_s10, 4096 }
 0x392   : > { %p1882_p4 = scmp.ne.s32.totalorder %s2874_s12, %s1881_s13  ;;  %p1886_p9 = scmp.lt.s32.totalorder %s2874_s12, %s2934_s10 }
 0x393   : > { %p1887_p10 = scmp.lt.s32.totalorder %s1885_s27, %s1881_s13 }
 0x394   : > { %p1883_p7 = pnand %p1882_p4, %p2032_p5 }
 0x395   : > { %p1888_p11 = por %p1887_p10, %p1886_p9 }
 0x396   : > { %p1884_p8 = pneg %p1883_p7 }
 0x398   : > { %p1889_p12 = pnand %p1888_p11, %p1884_p8 }
 0x39a   : > { %1892 = shalt.err (!%p1889_p12)
}
 0x39b   : > { %s1931_s11 = smov 128   ;;  %s1932_s14 = smov 8  }
 0x39c   : > { %1790 = dma.vmem_to_hbm [thread:$0]  (%p2032_p5), %s2876_s29, 2048, %s2874_s12, %s2884_s3, %s1931_s11, %s1931_s11, %s1932_s14  }
 0x39d PF: > { %p1796_p13 = scmp.ge.s32.totalorder %s1927_s20, 2  ;;  %s1647_s15 = sand.u32 1, %s1915_s17  }
 0x39e   : > { %s1648_s16 = scalar_lea.sflag [#allocation5], %s1647_s15 }
 0x39f   : > { %p1793_p0 = pnand %p1796_p13, %p2036_p6 }
 0x3a1   : > { %p1794_p1 = pneg %p1793_p0 }
 0x3a3   : > { %1910 = dma.done.wait (%p1794_p1), %s1648_s16, 2048  }
 0x3a4   : > { %1912 = vsyncadd (%p1794_p1), %s1648_s16, 4294965248  ;;  %p22_p2 = scmp.ge.s32.totalorder %s2019_s21, 4   ;;  %s2937_s17 = smov %s1919_s18 }
 0x3a5   : > { %s2938_s18 = smov %s1923_s19  ;;  %s2939_s19 = smov %s2030_s24 }
 0x3a6   : > { %s2940_s20 = smov %s2019_s21  ;;  %24 = sbr.rel (!%p22_p2) target bundleno = 6 (0x6), region = 95 }
 0x3ab   :  { %1653 = vsyncpa [#allocation5], 1 }
 0x3ac   :  { %1655 = vsyncpa [#allocation5 + $0x1], 1 }

</bundles_post_ra>
